<compile_context>
chip_gen: v7x
topology: tpu7x:2x2x1
jax: 0.10.0
libtpu: 0.0.40
codegen_flags: <defaults>
</compile_context>

<pallas_src>
import functools

import jax
import jax.numpy as jnp
import numpy as np
from jax.experimental import pallas as pl
from jax.experimental.pallas import tpu as pltpu


def round_up(x, m):
    return (x + m - 1) // m * m


BLOCK_CFG = (6, 12, 24, 16)
GROWTH = 32
BN_SIZE = 4
CONV0_KPAD = 256          # 7*7*3 = 147 zero-padded to a lane-aligned K


# ---------------------------------------------------------------------------
# Pallas kernels
# ---------------------------------------------------------------------------

def _matmul_kernel(x_ref, w_ref, o_ref):
    """Plain matmul: o = x @ w (bf16 operands, f32 accumulation)."""
    o_ref[...] = jnp.dot(x_ref[...].astype(jnp.bfloat16), w_ref[...],
                         preferred_element_type=jnp.float32).astype(o_ref.dtype)


def _bn_relu_matmul_kernel(x_ref, s_ref, b_ref, w_ref, o_ref):
    """o = relu(x * s + b) @ w.  Affine in f32 (v5e-safe), matmul in bf16."""
    x = jnp.maximum(x_ref[...] * s_ref[...] + b_ref[...], 0.0)
    o_ref[...] = jnp.dot(x.astype(jnp.bfloat16), w_ref[...],
                         preferred_element_type=jnp.float32).astype(o_ref.dtype)


def _pick_tm(M, cap=1024):
    """Choose an M tile that divides (padded) M exactly; pad only tiny Ms."""
    Mp = M if M % 8 == 0 else round_up(M, 8)
    if Mp <= 256:
        return Mp, Mp
    best = 8
    for d in range(8, min(Mp // 2, cap) + 1, 8):
        if Mp % d == 0:
            best = d
    if best < 128:                      # generic fallback (unused for our shapes)
        Mp = round_up(M, 512)
        best = 512
    return Mp, best


def _mm_pallas(x, w, scale=None, bias=None):
    """x:(M,K), w:(K,N) -> (M,N) f32, optional fused BN-affine+ReLU prologue."""
    M, K = x.shape
    N = w.shape[1]
    Mp, tm = _pick_tm(M)
    tn = 256 if N % 256 == 0 else (128 if N % 128 == 0 else N)
    if Mp != M:
        x = jnp.pad(x, ((0, Mp - M), (0, 0)))     # only tiny Ms (162, 2) hit this
    w = w.astype(jnp.bfloat16)
    if scale is None:
        kernel = _matmul_kernel
        in_specs = [pl.BlockSpec((tm, K), lambda i, j: (i, 0)),
                    pl.BlockSpec((K, tn), lambda i, j: (0, j))]
        args = (x, w)
    else:
        kernel = _bn_relu_matmul_kernel
        in_specs = [pl.BlockSpec((tm, K), lambda i, j: (i, 0)),
                    pl.BlockSpec((1, K), lambda i, j: (0, 0)),
                    pl.BlockSpec((1, K), lambda i, j: (0, 0)),
                    pl.BlockSpec((K, tn), lambda i, j: (0, j))]
        args = (x, scale.reshape(1, K).astype(jnp.float32),
                bias.reshape(1, K).astype(jnp.float32), w)
    out = pl.pallas_call(
        kernel,
        out_shape=jax.ShapeDtypeStruct((Mp, N), jnp.float32),
        grid_spec=pltpu.PrefetchScalarGridSpec(
            num_scalar_prefetch=0,
            grid=(Mp // tm, N // tn),
            in_specs=in_specs,
            out_specs=pl.BlockSpec((tm, tn), lambda i, j: (i, j))),
        compiler_params=pltpu.CompilerParams(
            dimension_semantics=("parallel", "parallel"),
            vmem_limit_bytes=64 * 1024 * 1024),
    )(*args)
    return out[:M] if Mp != M else out


def matmul(x, w):
    return _mm_pallas(x, w)


def bn_relu_matmul(x, scale, bias, w):
    return _mm_pallas(x, w, scale, bias)


def _conv3x3_kernel(x_ref, s_ref, b_ref, w_ref, o_ref, buf_ref, *, H, W, Wp, C, Cg):
    """Fused BN-affine + ReLU + 3x3/s1/p1 conv for one NHWC image.

    The activated image is written into a zero-padded, pitch-aligned (Wp % 8
    == 0) flat VMEM buffer; each of the 9 taps is then a contiguous row-shifted
    slice of that buffer feeding a single (H*Wp, C) x (C, Cg) MXU matmul.  No
    im2col, no reshapes, everything stays in VMEM.
    """
    y = jnp.maximum(x_ref[0] * s_ref[...] + b_ref[...], 0.0).astype(jnp.bfloat16)
    buf_ref[...] = jnp.zeros(((H + 3) * Wp, C), jnp.bfloat16)
    for r in range(H):                       # interior at padded coords (r+1, 1..W)
        base = (r + 1) * Wp + 1
        buf_ref[base:base + W, :] = y[r]
    acc = jnp.zeros((H * Wp, Cg), jnp.float32)
    for dy in range(3):
        for dx in range(3):
            off = dy * Wp + dx               # flat-row shift of tap (dy, dx)
            t = buf_ref[off:off + H * Wp, :]
            acc = acc + jnp.dot(t, w_ref[dy, dx],
                                preferred_element_type=jnp.float32)
    for r in range(H):                       # drop the pitch padding columns
        o_ref[0, r] = acc[r * Wp:r * Wp + W, :]


def conv3x3_bn_relu(x_nhwc, scale, bias, w):
    """x:(N,H,W,C), scale/bias:(C,), w:(3,3,C,Cg) -> (N,H,W,Cg) f32."""
    Nb, H, W, C = x_nhwc.shape
    Cg = w.shape[-1]
    Wp = round_up(W + 2, 8)
    return pl.pallas_call(
        functools.partial(_conv3x3_kernel, H=H, W=W, Wp=Wp, C=C, Cg=Cg),
        out_shape=jax.ShapeDtypeStruct((Nb, H, W, Cg), jnp.float32),
        grid_spec=pltpu.PrefetchScalarGridSpec(
            num_scalar_prefetch=0,
            grid=(Nb,),
            in_specs=[pl.BlockSpec((1, H, W, C), lambda n: (n, 0, 0, 0)),
                      pl.BlockSpec((1, 1, C), lambda n: (0, 0, 0)),
                      pl.BlockSpec((1, 1, C), lambda n: (0, 0, 0)),
                      pl.BlockSpec((3, 3, C, Cg), lambda n: (0, 0, 0, 0))],
            out_specs=pl.BlockSpec((1, H, W, Cg), lambda n: (n, 0, 0, 0)),
            scratch_shapes=[pltpu.VMEM(((H + 3) * Wp, C), jnp.bfloat16)]),
        compiler_params=pltpu.CompilerParams(
            dimension_semantics=("parallel",),
            vmem_limit_bytes=64 * 1024 * 1024),
    )(x_nhwc, scale.reshape(1, 1, C).astype(jnp.float32),
      bias.reshape(1, 1, C).astype(jnp.float32), w.astype(jnp.bfloat16))


# ---------------------------------------------------------------------------
# JAX glue: im2col (conv0 only), pooling, single-pass batch-norm statistics
# ---------------------------------------------------------------------------

def im2col(x, kh, kw, stride, pad):
    """x:(N,H,W,C) NHWC -> (N*Ho*Wo, kh*kw*C) patches (flatten order (kh,kw,C))."""
    N, H, W, C = x.shape
    Ho = (H + 2 * pad - kh) // stride + 1
    Wo = (W + 2 * pad - kw) // stride + 1
    xp = jnp.pad(x, ((0, 0), (pad, pad), (pad, pad), (0, 0)))
    cols = []
    for i in range(kh):
        for j in range(kw):
            cols.append(jax.lax.slice(
                xp,
                (0, i, j, 0),
                (N, i + (Ho - 1) * stride + 1, j + (Wo - 1) * stride + 1, C),
                (1, stride, stride, 1)))
    patches = jnp.stack(cols, axis=3)            # (N,Ho,Wo,kh*kw,C)
    return patches.reshape(N * Ho * Wo, kh * kw * C), Ho, Wo


def maxpool_3x3_s2_p1(x):  # NHWC, matches nn.MaxPool2d(3, 2, 1)
    return jax.lax.reduce_window(
        x, -jnp.inf, jax.lax.max,
        window_dimensions=(1, 3, 3, 1),
        window_strides=(1, 2, 2, 1),
        padding=((0, 0), (1, 1), (1, 1), (0, 0)))


def avgpool_2x2(x):  # NHWC, matches nn.AvgPool2d(2, 2)
    N, H, W, C = x.shape
    return x.reshape(N, H // 2, 2, W // 2, 2, C).mean(axis=(2, 4))


def bn_scale_bias(x2d, gamma, beta, eps=1e-5):
    """Train-mode BatchNorm folded to per-channel scale/bias (single pass)."""
    m = x2d.shape[0]
    s1 = jnp.sum(x2d, axis=0)
    s2 = jnp.sum(x2d * x2d, axis=0)
    mean = s1 / m
    var = jnp.maximum(s2 / m - mean * mean, 0.0)
    scale = gamma * jax.lax.rsqrt(var + eps)
    bias = beta - mean * scale
    return scale, bias


# ---------------------------------------------------------------------------
# Deterministic synthetic parameters (DenseNet-121 shapes)
# ---------------------------------------------------------------------------

def init_params(seed=0):
    base = jax.random.PRNGKey(seed)
    cnt = [0]

    def nxt():
        cnt[0] += 1
        return jax.random.fold_in(base, cnt[0])

    def conv_w(kh, kw, cin, cout):
        fan_in = kh * kw * cin
        w = jax.random.normal(nxt(), (kh, kw, cin, cout), jnp.float32)
        return (w / np.sqrt(fan_in)).reshape(kh * kw * cin, cout)

    def bn_p(c):
        g = 1.0 + 0.1 * jax.random.normal(nxt(), (c,), jnp.float32)
        b = 0.1 * jax.random.normal(nxt(), (c,), jnp.float32)
        return g, b

    p = {}
    p["conv0"] = conv_w(7, 7, 3, 64)
    p["norm0"] = bn_p(64)
    c = 64
    for bi, nl in enumerate(BLOCK_CFG):
        layers = []
        for _ in range(nl):
            layers.append(dict(
                norm1=bn_p(c),
                conv1=conv_w(1, 1, c, BN_SIZE * GROWTH),
                norm2=bn_p(BN_SIZE * GROWTH),
                conv2=conv_w(3, 3, BN_SIZE * GROWTH, GROWTH),
            ))
            c += GROWTH
        p[f"block{bi + 1}"] = layers
        if bi < 3:
            p[f"trans{bi + 1}"] = dict(norm=bn_p(c), conv=conv_w(1, 1, c, c // 2))
            c //= 2
    p["norm5"] = bn_p(c)  # c == 1024
    p["linear_w"] = jax.random.normal(nxt(), (1024, 2), jnp.float32) / np.sqrt(1024.0)
    p["linear_b"] = 0.01 * jax.random.normal(nxt(), (2,), jnp.float32)
    return p


def prepare_params(p):
    """One-time layout prep: bf16 weights, conv1/norm1 zero-padded to C_final."""
    q = {"conv0": jnp.pad(p["conv0"], ((0, CONV0_KPAD - p["conv0"].shape[0]), (0, 0))
                          ).astype(jnp.bfloat16),
         "norm0": p["norm0"]}
    c = 64
    for bi, nl in enumerate(BLOCK_CFG):
        cf = c + nl * GROWTH
        layers = []
        for li in range(nl):
            lp = p[f"block{bi + 1}"][li]
            cin = c + li * GROWTH
            g1, b1 = lp["norm1"]
            layers.append(dict(
                n1g=jnp.pad(g1, (0, cf - cin)),
                n1b=jnp.pad(b1, (0, cf - cin)),
                w1=jnp.pad(lp["conv1"], ((0, cf - cin), (0, 0))).astype(jnp.bfloat16),
                n2g=lp["norm2"][0], n2b=lp["norm2"][1],
                w2=lp["conv2"].reshape(3, 3, BN_SIZE * GROWTH, GROWTH
                                       ).astype(jnp.bfloat16),
            ))
        q[f"block{bi + 1}"] = layers
        c = cf
        if bi < 3:
            tp = p[f"trans{bi + 1}"]
            q[f"trans{bi + 1}"] = dict(g=tp["norm"][0], b=tp["norm"][1],
                                       w=tp["conv"].astype(jnp.bfloat16))
            c //= 2
    q["n5g"], q["n5b"] = p["norm5"]
    q["linear_w"] = p["linear_w"]
    q["linear_b"] = p["linear_b"]
    return q


# ---------------------------------------------------------------------------
# Forward pass
# ---------------------------------------------------------------------------

def forward(p, x_nchw):
    x = jnp.transpose(x_nchw, (0, 2, 3, 1)).astype(jnp.float32)  # NCHW -> NHWC
    Nb = x.shape[0]

    # ---- conv0 (7x7 / 2, pad 3, no bias): one-time im2col + plain matmul ----
    patches, Ho, Wo = im2col(x, 7, 7, 2, 3)
    patches = jnp.pad(patches.astype(jnp.bfloat16),
                      ((0, 0), (0, CONV0_KPAD - patches.shape[1])))
    y = matmul(patches, p["conv0"])                               # (M, 64) f32
    # ---- norm0 + relu0 (glue, fused by XLA) + maxpool(3,2,1) ----
    s0, b0 = bn_scale_bias(y, *p["norm0"])
    y = jnp.maximum(y * s0[None, :] + b0[None, :], 0.0)
    x = maxpool_3x3_s2_p1(y.reshape(Nb, Ho, Wo, 64))              # (N,72,72,64)

    # ---- dense blocks / transitions ----
    for bi, nl in enumerate(BLOCK_CFG):
        _, H, W, C0 = x.shape
        M = Nb * H * W
        Cf = C0 + nl * GROWTH
        # preallocated feature buffer; later columns start as zeros
        buf = jnp.pad(x.reshape(M, C0), ((0, 0), (0, Cf - C0)))
        C = C0
        for li in range(nl):
            lp = p[f"block{bi + 1}"][li]
            # norm1 -> relu -> conv1 (1x1), fused in one Pallas matmul.
            # (padded channels have gamma=beta=0 and zero weight rows, so they
            #  contribute nothing.)
            s1, b1 = bn_scale_bias(buf, lp["n1g"], lp["n1b"])
            bott = bn_relu_matmul(buf, s1, b1, lp["w1"])          # (M, 128)
            # norm2 -> relu -> conv2 (3x3), fully fused in the conv kernel.
            s2, b2 = bn_scale_bias(bott, lp["n2g"], lp["n2b"])
            new = conv3x3_bn_relu(bott.reshape(Nb, H, W, BN_SIZE * GROWTH),
                                  s2, b2, lp["w2"])               # (N,H,W,32)
            buf = jax.lax.dynamic_update_slice(buf, new.reshape(M, GROWTH), (0, C))
            C += GROWTH
        if bi < 3:
            tp = p[f"trans{bi + 1}"]
            st, bt = bn_scale_bias(buf, tp["g"], tp["b"])
            t = bn_relu_matmul(buf, st, bt, tp["w"])              # (M, Cf//2)
            x = avgpool_2x2(t.reshape(Nb, H, W, Cf // 2))
        else:
            x = buf.reshape(Nb, H, W, Cf)

    # ---- norm5 (no ReLU) + AvgPool2d(9,15) + view + Linear(1024,2) ----
    _, H, W, Cf = x.shape                     # (N, 9, 9, 1024)
    feats = x.reshape(Nb * H * W, Cf)
    s5, b5 = bn_scale_bias(feats, p["n5g"], p["n5b"])
    gap = x.reshape(Nb, H * W, Cf).mean(axis=1)     # GAP commutes with the affine
    w_eff = s5[:, None] * p["linear_w"]             # fold norm5 affine into linear
    b_eff = p["linear_b"] + b5 @ p["linear_w"]
    logits = matmul(gap, w_eff) + b_eff[None, :]
    return logits


# ---------------------------------------------------------------------------

def _selftest_conv3x3():
    """Check the fused 3x3 conv kernel against lax.conv on a small case."""
    k1, k2, k3, k4 = jax.random.split(jax.random.PRNGKey(1), 4)
    x = jax.random.normal(k1, (2, 9, 9, 128), jnp.float32)
    s = 1.0 + 0.1 * jax.random.normal(k2, (128,), jnp.float32)
    b = 0.1 * jax.random.normal(k3, (128,), jnp.float32)
    w = (jax.random.normal(k4, (3, 3, 128, 32), jnp.float32)
         / np.sqrt(9 * 128)).astype(jnp.bfloat16)
    out = conv3x3_bn_relu(x, s, b, w)
    act = jnp.maximum(x * s + b, 0.0).astype(jnp.bfloat16).astype(jnp.float32)
    ref = jax.lax.conv_general_dilated(
        act, w.astype(jnp.float32), window_strides=(1, 1), padding="SAME",
        dimension_numbers=("NHWC", "HWIO", "NHWC"))
    err = jnp.max(jnp.abs(out - ref)) / (jnp.max(jnp.abs(ref)) + 1e-6)
    assert float(err) < 1e-2, f"conv3x3 self-test failed: rel err {float(err)}"


if __name__ == "__main__":
    _selftest_conv3x3()

    params = prepare_params(init_params(0))
    # GAP(kernel=9, stride=15) + view(-1, 1024) requires a 9x9x1024 feature map,
    # i.e. a 288x288 RGB input (smallest canonical size for this module).
    x = jax.random.normal(jax.random.PRNGKey(0), (2, 3, 288, 288), jnp.float32)

    fwd = jax.jit(forward)
    out = jax.block_until_ready(fwd(params, x))
    assert out.shape == (2, 2), out.shape
    assert bool(jnp.all(jnp.isfinite(out)))
    print("KERNEL_OK")
</pallas_src>

<mosaic_0001>
module attributes {stable_mosaic.version = 11 : i64} {
  func.func @_conv3x3_kernel(%arg0: i32, %arg1: memref<1x9x9x128xf32, #tpu.memory_space<vmem>>, %arg2: memref<1x1x128xf32, #tpu.memory_space<vmem>>, %arg3: memref<1x1x128xf32, #tpu.memory_space<vmem>>, %arg4: memref<3x3x128x32xbf16, #tpu.memory_space<vmem>>, %arg5: memref<1x9x9x32xf32, #tpu.memory_space<vmem>>, %arg6: memref<192x128xbf16, #tpu.memory_space<vmem>>) attributes {dimension_semantics = [#tpu.dimension_semantics<parallel>], iteration_bounds = array<i64: 2>, scalar_prefetch = 0 : i64, scratch_operands = 1 : i64, tpu.core_type = #tpu.core_type<tc>, window_params = [{transform_indices = @transform_0, window_bounds = array<i64: 1, 9, 9, 128>}, {pipeline_mode = #tpu.pipeline_mode<synchronous>, transform_indices = @transform_1, window_bounds = array<i64: 1, 1, 128>}, {pipeline_mode = #tpu.pipeline_mode<synchronous>, transform_indices = @transform_2, window_bounds = array<i64: 1, 1, 128>}, {pipeline_mode = #tpu.pipeline_mode<synchronous>, transform_indices = @transform_3, window_bounds = array<i64: 3, 3, 128, 32>}, {transform_indices = @transform_4, window_bounds = array<i64: 1, 9, 9, 32>}]} {
    %c0 = arith.constant 0 : index
    %c0_0 = arith.constant 0 : index
    %c0_1 = arith.constant 0 : index
    %c0_2 = arith.constant 0 : index
    %0 = vector.load %arg1[%c0, %c0_0, %c0_1, %c0_2] : memref<1x9x9x128xf32, #tpu.memory_space<vmem>>, vector<1x9x9x128xf32>
    %1 = vector.shape_cast %0 : vector<1x9x9x128xf32> to vector<9x9x128xf32>
    %c0_3 = arith.constant 0 : index
    %c0_4 = arith.constant 0 : index
    %c0_5 = arith.constant 0 : index
    %2 = vector.load %arg2[%c0_3, %c0_4, %c0_5] : memref<1x1x128xf32, #tpu.memory_space<vmem>>, vector<1x1x128xf32>
    %3 = vector.broadcast %2 : vector<1x1x128xf32> to vector<9x9x128xf32>
    %4 = arith.mulf %1, %3 : vector<9x9x128xf32>
    %c0_6 = arith.constant 0 : index
    %c0_7 = arith.constant 0 : index
    %c0_8 = arith.constant 0 : index
    %5 = vector.load %arg3[%c0_6, %c0_7, %c0_8] : memref<1x1x128xf32, #tpu.memory_space<vmem>>, vector<1x1x128xf32>
    %6 = vector.broadcast %5 : vector<1x1x128xf32> to vector<9x9x128xf32>
    %7 = arith.addf %4, %6 : vector<9x9x128xf32>
    %cst = arith.constant 0.000000e+00 : f32
    %8 = vector.broadcast %cst : f32 to vector<9x9x128xf32>
    %9 = arith.maximumf %7, %8 : vector<9x9x128xf32>
    %10 = arith.truncf %9 : vector<9x9x128xf32> to vector<9x9x128xbf16>
    %cst_9 = arith.constant 0.000000e+00 : bf16
    %11 = vector.broadcast %cst_9 : bf16 to vector<192x128xbf16>
    %c0_10 = arith.constant 0 : index
    %c0_11 = arith.constant 0 : index
    %12 = vector.load %arg6[%c0_10, %c0_11] : memref<192x128xbf16, #tpu.memory_space<vmem>>, vector<192x128xbf16>
    tpu.vector_store %arg6[%c0_10, %c0_11], %11 {strides = array<i32>} : memref<192x128xbf16, #tpu.memory_space<vmem>>, vector<192x128xbf16>,
    %13 = vector.extract_strided_slice %10 {offsets = [0, 0, 0], sizes = [1, 9, 128], strides = [1, 1, 1]} : vector<9x9x128xbf16> to vector<1x9x128xbf16>
    %14 = vector.shape_cast %13 : vector<1x9x128xbf16> to vector<9x128xbf16>
    %c17 = arith.constant 17 : index
    %c0_12 = arith.constant 0 : index
    %15 = vector.load %arg6[%c17, %c0_12] : memref<192x128xbf16, #tpu.memory_space<vmem>>, vector<9x128xbf16>
    tpu.vector_store %arg6[%c17, %c0_12], %14 {strides = array<i32>} : memref<192x128xbf16, #tpu.memory_space<vmem>>, vector<9x128xbf16>,
    %16 = vector.extract_strided_slice %10 {offsets = [1, 0, 0], sizes = [1, 9, 128], strides = [1, 1, 1]} : vector<9x9x128xbf16> to vector<1x9x128xbf16>
    %17 = vector.shape_cast %16 : vector<1x9x128xbf16> to vector<9x128xbf16>
    %c33 = arith.constant 33 : index
    %c0_13 = arith.constant 0 : index
    %18 = vector.load %arg6[%c33, %c0_13] : memref<192x128xbf16, #tpu.memory_space<vmem>>, vector<9x128xbf16>
    tpu.vector_store %arg6[%c33, %c0_13], %17 {strides = array<i32>} : memref<192x128xbf16, #tpu.memory_space<vmem>>, vector<9x128xbf16>,
    %19 = vector.extract_strided_slice %10 {offsets = [2, 0, 0], sizes = [1, 9, 128], strides = [1, 1, 1]} : vector<9x9x128xbf16> to vector<1x9x128xbf16>
    %20 = vector.shape_cast %19 : vector<1x9x128xbf16> to vector<9x128xbf16>
    %c49 = arith.constant 49 : index
    %c0_14 = arith.constant 0 : index
    %21 = vector.load %arg6[%c49, %c0_14] : memref<192x128xbf16, #tpu.memory_space<vmem>>, vector<9x128xbf16>
    tpu.vector_store %arg6[%c49, %c0_14], %20 {strides = array<i32>} : memref<192x128xbf16, #tpu.memory_space<vmem>>, vector<9x128xbf16>,
    %22 = vector.extract_strided_slice %10 {offsets = [3, 0, 0], sizes = [1, 9, 128], strides = [1, 1, 1]} : vector<9x9x128xbf16> to vector<1x9x128xbf16>
    %23 = vector.shape_cast %22 : vector<1x9x128xbf16> to vector<9x128xbf16>
    %c65 = arith.constant 65 : index
    %c0_15 = arith.constant 0 : index
    %24 = vector.load %arg6[%c65, %c0_15] : memref<192x128xbf16, #tpu.memory_space<vmem>>, vector<9x128xbf16>
    tpu.vector_store %arg6[%c65, %c0_15], %23 {strides = array<i32>} : memref<192x128xbf16, #tpu.memory_space<vmem>>, vector<9x128xbf16>,
    %25 = vector.extract_strided_slice %10 {offsets = [4, 0, 0], sizes = [1, 9, 128], strides = [1, 1, 1]} : vector<9x9x128xbf16> to vector<1x9x128xbf16>
    %26 = vector.shape_cast %25 : vector<1x9x128xbf16> to vector<9x128xbf16>
    %c81 = arith.constant 81 : index
    %c0_16 = arith.constant 0 : index
    %27 = vector.load %arg6[%c81, %c0_16] : memref<192x128xbf16, #tpu.memory_space<vmem>>, vector<9x128xbf16>
    tpu.vector_store %arg6[%c81, %c0_16], %26 {strides = array<i32>} : memref<192x128xbf16, #tpu.memory_space<vmem>>, vector<9x128xbf16>,
    %28 = vector.extract_strided_slice %10 {offsets = [5, 0, 0], sizes = [1, 9, 128], strides = [1, 1, 1]} : vector<9x9x128xbf16> to vector<1x9x128xbf16>
    %29 = vector.shape_cast %28 : vector<1x9x128xbf16> to vector<9x128xbf16>
    %c97 = arith.constant 97 : index
    %c0_17 = arith.constant 0 : index
    %30 = vector.load %arg6[%c97, %c0_17] : memref<192x128xbf16, #tpu.memory_space<vmem>>, vector<9x128xbf16>
    tpu.vector_store %arg6[%c97, %c0_17], %29 {strides = array<i32>} : memref<192x128xbf16, #tpu.memory_space<vmem>>, vector<9x128xbf16>,
    %31 = vector.extract_strided_slice %10 {offsets = [6, 0, 0], sizes = [1, 9, 128], strides = [1, 1, 1]} : vector<9x9x128xbf16> to vector<1x9x128xbf16>
    %32 = vector.shape_cast %31 : vector<1x9x128xbf16> to vector<9x128xbf16>
    %c113 = arith.constant 113 : index
    %c0_18 = arith.constant 0 : index
    %33 = vector.load %arg6[%c113, %c0_18] : memref<192x128xbf16, #tpu.memory_space<vmem>>, vector<9x128xbf16>
    tpu.vector_store %arg6[%c113, %c0_18], %32 {strides = array<i32>} : memref<192x128xbf16, #tpu.memory_space<vmem>>, vector<9x128xbf16>,
    %34 = vector.extract_strided_slice %10 {offsets = [7, 0, 0], sizes = [1, 9, 128], strides = [1, 1, 1]} : vector<9x9x128xbf16> to vector<1x9x128xbf16>
    %35 = vector.shape_cast %34 : vector<1x9x128xbf16> to vector<9x128xbf16>
    %c129 = arith.constant 129 : index
    %c0_19 = arith.constant 0 : index
    %36 = vector.load %arg6[%c129, %c0_19] : memref<192x128xbf16, #tpu.memory_space<vmem>>, vector<9x128xbf16>
    tpu.vector_store %arg6[%c129, %c0_19], %35 {strides = array<i32>} : memref<192x128xbf16, #tpu.memory_space<vmem>>, vector<9x128xbf16>,
    %37 = vector.extract_strided_slice %10 {offsets = [8, 0, 0], sizes = [1, 9, 128], strides = [1, 1, 1]} : vector<9x9x128xbf16> to vector<1x9x128xbf16>
    %38 = vector.shape_cast %37 : vector<1x9x128xbf16> to vector<9x128xbf16>
    %c145 = arith.constant 145 : index
    %c0_20 = arith.constant 0 : index
    %39 = vector.load %arg6[%c145, %c0_20] : memref<192x128xbf16, #tpu.memory_space<vmem>>, vector<9x128xbf16>
    tpu.vector_store %arg6[%c145, %c0_20], %38 {strides = array<i32>} : memref<192x128xbf16, #tpu.memory_space<vmem>>, vector<9x128xbf16>,
    %cst_21 = arith.constant 0.000000e+00 : f32
    %40 = vector.broadcast %cst_21 : f32 to vector<144x32xf32>
    %c0_22 = arith.constant 0 : index
    %c0_23 = arith.constant 0 : index
    %41 = vector.load %arg6[%c0_22, %c0_23] : memref<192x128xbf16, #tpu.memory_space<vmem>>, vector<144x128xbf16>
    %c0_24 = arith.constant 0 : index
    %c0_25 = arith.constant 0 : index
    %c0_26 = arith.constant 0 : index
    %c0_27 = arith.constant 0 : index
    %42 = vector.load %arg4[%c0_24, %c0_25, %c0_26, %c0_27] : memref<3x3x128x32xbf16, #tpu.memory_space<vmem>>, vector<1x1x128x32xbf16>
    %43 = vector.shape_cast %42 : vector<1x1x128x32xbf16> to vector<128x32xbf16>
    %cst_28 = arith.constant dense<0.000000e+00> : vector<144x32xf32>
    %44 = tpu.matmul %41, %43, %cst_28 {dimension_numbers = #tpu.dot_dimension_numbers<[1], [0], [0], [1], [0, 0, 1, 1], [], []>} : vector<144x128xbf16>, vector<128x32xbf16>, vector<144x32xf32> -> vector<144x32xf32>
    %45 = arith.addf %40, %44 : vector<144x32xf32>
    %c1 = arith.constant 1 : index
    %c0_29 = arith.constant 0 : index
    %46 = vector.load %arg6[%c1, %c0_29] : memref<192x128xbf16, #tpu.memory_space<vmem>>, vector<144x128xbf16>
    %c0_30 = arith.constant 0 : index
    %c1_31 = arith.constant 1 : index
    %c0_32 = arith.constant 0 : index
    %c0_33 = arith.constant 0 : index
    %47 = vector.load %arg4[%c0_30, %c1_31, %c0_32, %c0_33] : memref<3x3x128x32xbf16, #tpu.memory_space<vmem>>, vector<1x1x128x32xbf16>
    %48 = vector.shape_cast %47 : vector<1x1x128x32xbf16> to vector<128x32xbf16>
    %cst_34 = arith.constant dense<0.000000e+00> : vector<144x32xf32>
    %49 = tpu.matmul %46, %48, %cst_34 {dimension_numbers = #tpu.dot_dimension_numbers<[1], [0], [0], [1], [0, 0, 1, 1], [], []>} : vector<144x128xbf16>, vector<128x32xbf16>, vector<144x32xf32> -> vector<144x32xf32>
    %50 = arith.addf %45, %49 : vector<144x32xf32>
    %c2 = arith.constant 2 : index
    %c0_35 = arith.constant 0 : index
    %51 = vector.load %arg6[%c2, %c0_35] : memref<192x128xbf16, #tpu.memory_space<vmem>>, vector<144x128xbf16>
    %c0_36 = arith.constant 0 : index
    %c2_37 = arith.constant 2 : index
    %c0_38 = arith.constant 0 : index
    %c0_39 = arith.constant 0 : index
    %52 = vector.load %arg4[%c0_36, %c2_37, %c0_38, %c0_39] : memref<3x3x128x32xbf16, #tpu.memory_space<vmem>>, vector<1x1x128x32xbf16>
    %53 = vector.shape_cast %52 : vector<1x1x128x32xbf16> to vector<128x32xbf16>
    %cst_40 = arith.constant dense<0.000000e+00> : vector<144x32xf32>
    %54 = tpu.matmul %51, %53, %cst_40 {dimension_numbers = #tpu.dot_dimension_numbers<[1], [0], [0], [1], [0, 0, 1, 1], [], []>} : vector<144x128xbf16>, vector<128x32xbf16>, vector<144x32xf32> -> vector<144x32xf32>
    %55 = arith.addf %50, %54 : vector<144x32xf32>
    %c16 = arith.constant 16 : index
    %c0_41 = arith.constant 0 : index
    %56 = vector.load %arg6[%c16, %c0_41] : memref<192x128xbf16, #tpu.memory_space<vmem>>, vector<144x128xbf16>
    %c1_42 = arith.constant 1 : index
    %c0_43 = arith.constant 0 : index
    %c0_44 = arith.constant 0 : index
    %c0_45 = arith.constant 0 : index
    %57 = vector.load %arg4[%c1_42, %c0_43, %c0_44, %c0_45] : memref<3x3x128x32xbf16, #tpu.memory_space<vmem>>, vector<1x1x128x32xbf16>
    %58 = vector.shape_cast %57 : vector<1x1x128x32xbf16> to vector<128x32xbf16>
    %cst_46 = arith.constant dense<0.000000e+00> : vector<144x32xf32>
    %59 = tpu.matmul %56, %58, %cst_46 {dimension_numbers = #tpu.dot_dimension_numbers<[1], [0], [0], [1], [0, 0, 1, 1], [], []>} : vector<144x128xbf16>, vector<128x32xbf16>, vector<144x32xf32> -> vector<144x32xf32>
    %60 = arith.addf %55, %59 : vector<144x32xf32>
    %c17_47 = arith.constant 17 : index
    %c0_48 = arith.constant 0 : index
    %61 = vector.load %arg6[%c17_47, %c0_48] : memref<192x128xbf16, #tpu.memory_space<vmem>>, vector<144x128xbf16>
    %c1_49 = arith.constant 1 : index
    %c1_50 = arith.constant 1 : index
    %c0_51 = arith.constant 0 : index
    %c0_52 = arith.constant 0 : index
    %62 = vector.load %arg4[%c1_49, %c1_50, %c0_51, %c0_52] : memref<3x3x128x32xbf16, #tpu.memory_space<vmem>>, vector<1x1x128x32xbf16>
    %63 = vector.shape_cast %62 : vector<1x1x128x32xbf16> to vector<128x32xbf16>
    %cst_53 = arith.constant dense<0.000000e+00> : vector<144x32xf32>
    %64 = tpu.matmul %61, %63, %cst_53 {dimension_numbers = #tpu.dot_dimension_numbers<[1], [0], [0], [1], [0, 0, 1, 1], [], []>} : vector<144x128xbf16>, vector<128x32xbf16>, vector<144x32xf32> -> vector<144x32xf32>
    %65 = arith.addf %60, %64 : vector<144x32xf32>
    %c18 = arith.constant 18 : index
    %c0_54 = arith.constant 0 : index
    %66 = vector.load %arg6[%c18, %c0_54] : memref<192x128xbf16, #tpu.memory_space<vmem>>, vector<144x128xbf16>
    %c1_55 = arith.constant 1 : index
    %c2_56 = arith.constant 2 : index
    %c0_57 = arith.constant 0 : index
    %c0_58 = arith.constant 0 : index
    %67 = vector.load %arg4[%c1_55, %c2_56, %c0_57, %c0_58] : memref<3x3x128x32xbf16, #tpu.memory_space<vmem>>, vector<1x1x128x32xbf16>
    %68 = vector.shape_cast %67 : vector<1x1x128x32xbf16> to vector<128x32xbf16>
    %cst_59 = arith.constant dense<0.000000e+00> : vector<144x32xf32>
    %69 = tpu.matmul %66, %68, %cst_59 {dimension_numbers = #tpu.dot_dimension_numbers<[1], [0], [0], [1], [0, 0, 1, 1], [], []>} : vector<144x128xbf16>, vector<128x32xbf16>, vector<144x32xf32> -> vector<144x32xf32>
    %70 = arith.addf %65, %69 : vector<144x32xf32>
    %c32 = arith.constant 32 : index
    %c0_60 = arith.constant 0 : index
    %71 = vector.load %arg6[%c32, %c0_60] : memref<192x128xbf16, #tpu.memory_space<vmem>>, vector<144x128xbf16>
    %c2_61 = arith.constant 2 : index
    %c0_62 = arith.constant 0 : index
    %c0_63 = arith.constant 0 : index
    %c0_64 = arith.constant 0 : index
    %72 = vector.load %arg4[%c2_61, %c0_62, %c0_63, %c0_64] : memref<3x3x128x32xbf16, #tpu.memory_space<vmem>>, vector<1x1x128x32xbf16>
    %73 = vector.shape_cast %72 : vector<1x1x128x32xbf16> to vector<128x32xbf16>
    %cst_65 = arith.constant dense<0.000000e+00> : vector<144x32xf32>
    %74 = tpu.matmul %71, %73, %cst_65 {dimension_numbers = #tpu.dot_dimension_numbers<[1], [0], [0], [1], [0, 0, 1, 1], [], []>} : vector<144x128xbf16>, vector<128x32xbf16>, vector<144x32xf32> -> vector<144x32xf32>
    %75 = arith.addf %70, %74 : vector<144x32xf32>
    %c33_66 = arith.constant 33 : index
    %c0_67 = arith.constant 0 : index
    %76 = vector.load %arg6[%c33_66, %c0_67] : memref<192x128xbf16, #tpu.memory_space<vmem>>, vector<144x128xbf16>
    %c2_68 = arith.constant 2 : index
    %c1_69 = arith.constant 1 : index
    %c0_70 = arith.constant 0 : index
    %c0_71 = arith.constant 0 : index
    %77 = vector.load %arg4[%c2_68, %c1_69, %c0_70, %c0_71] : memref<3x3x128x32xbf16, #tpu.memory_space<vmem>>, vector<1x1x128x32xbf16>
    %78 = vector.shape_cast %77 : vector<1x1x128x32xbf16> to vector<128x32xbf16>
    %cst_72 = arith.constant dense<0.000000e+00> : vector<144x32xf32>
    %79 = tpu.matmul %76, %78, %cst_72 {dimension_numbers = #tpu.dot_dimension_numbers<[1], [0], [0], [1], [0, 0, 1, 1], [], []>} : vector<144x128xbf16>, vector<128x32xbf16>, vector<144x32xf32> -> vector<144x32xf32>
    %80 = arith.addf %75, %79 : vector<144x32xf32>
    %c34 = arith.constant 34 : index
    %c0_73 = arith.constant 0 : index
    %81 = vector.load %arg6[%c34, %c0_73] : memref<192x128xbf16, #tpu.memory_space<vmem>>, vector<144x128xbf16>
    %c2_74 = arith.constant 2 : index
    %c2_75 = arith.constant 2 : index
    %c0_76 = arith.constant 0 : index
    %c0_77 = arith.constant 0 : index
    %82 = vector.load %arg4[%c2_74, %c2_75, %c0_76, %c0_77] : memref<3x3x128x32xbf16, #tpu.memory_space<vmem>>, vector<1x1x128x32xbf16>
    %83 = vector.shape_cast %82 : vector<1x1x128x32xbf16> to vector<128x32xbf16>
    %cst_78 = arith.constant dense<0.000000e+00> : vector<144x32xf32>
    %84 = tpu.matmul %81, %83, %cst_78 {dimension_numbers = #tpu.dot_dimension_numbers<[1], [0], [0], [1], [0, 0, 1, 1], [], []>} : vector<144x128xbf16>, vector<128x32xbf16>, vector<144x32xf32> -> vector<144x32xf32>
    %85 = arith.addf %80, %84 : vector<144x32xf32>
    %86 = vector.extract_strided_slice %85 {offsets = [0, 0], sizes = [9, 32], strides = [1, 1]} : vector<144x32xf32> to vector<9x32xf32>
    %c0_79 = arith.constant 0 : index
    %c0_80 = arith.constant 0 : index
    %c0_81 = arith.constant 0 : index
    %c0_82 = arith.constant 0 : index
    %87 = vector.load %arg5[%c0_79, %c0_80, %c0_81, %c0_82] : memref<1x9x9x32xf32, #tpu.memory_space<vmem>>, vector<1x1x9x32xf32>
    %88 = vector.shape_cast %87 : vector<1x1x9x32xf32> to vector<9x32xf32>
    %89 = vector.shape_cast %86 : vector<9x32xf32> to vector<1x1x9x32xf32>
    tpu.vector_store %arg5[%c0_79, %c0_80, %c0_81, %c0_82], %89 {strides = array<i32>} : memref<1x9x9x32xf32, #tpu.memory_space<vmem>>, vector<1x1x9x32xf32>,
    %90 = vector.extract_strided_slice %85 {offsets = [16, 0], sizes = [9, 32], strides = [1, 1]} : vector<144x32xf32> to vector<9x32xf32>
    %c0_83 = arith.constant 0 : index
    %c1_84 = arith.constant 1 : index
    %c0_85 = arith.constant 0 : index
    %c0_86 = arith.constant 0 : index
    %91 = vector.load %arg5[%c0_83, %c1_84, %c0_85, %c0_86] : memref<1x9x9x32xf32, #tpu.memory_space<vmem>>, vector<1x1x9x32xf32>
    %92 = vector.shape_cast %91 : vector<1x1x9x32xf32> to vector<9x32xf32>
    %93 = vector.shape_cast %90 : vector<9x32xf32> to vector<1x1x9x32xf32>
    tpu.vector_store %arg5[%c0_83, %c1_84, %c0_85, %c0_86], %93 {strides = array<i32>} : memref<1x9x9x32xf32, #tpu.memory_space<vmem>>, vector<1x1x9x32xf32>,
    %94 = vector.extract_strided_slice %85 {offsets = [32, 0], sizes = [9, 32], strides = [1, 1]} : vector<144x32xf32> to vector<9x32xf32>
    %c0_87 = arith.constant 0 : index
    %c2_88 = arith.constant 2 : index
    %c0_89 = arith.constant 0 : index
    %c0_90 = arith.constant 0 : index
    %95 = vector.load %arg5[%c0_87, %c2_88, %c0_89, %c0_90] : memref<1x9x9x32xf32, #tpu.memory_space<vmem>>, vector<1x1x9x32xf32>
    %96 = vector.shape_cast %95 : vector<1x1x9x32xf32> to vector<9x32xf32>
    %97 = vector.shape_cast %94 : vector<9x32xf32> to vector<1x1x9x32xf32>
    tpu.vector_store %arg5[%c0_87, %c2_88, %c0_89, %c0_90], %97 {strides = array<i32>} : memref<1x9x9x32xf32, #tpu.memory_space<vmem>>, vector<1x1x9x32xf32>,
    %98 = vector.extract_strided_slice %85 {offsets = [48, 0], sizes = [9, 32], strides = [1, 1]} : vector<144x32xf32> to vector<9x32xf32>
    %c0_91 = arith.constant 0 : index
    %c3 = arith.constant 3 : index
    %c0_92 = arith.constant 0 : index
    %c0_93 = arith.constant 0 : index
    %99 = vector.load %arg5[%c0_91, %c3, %c0_92, %c0_93] : memref<1x9x9x32xf32, #tpu.memory_space<vmem>>, vector<1x1x9x32xf32>
    %100 = vector.shape_cast %99 : vector<1x1x9x32xf32> to vector<9x32xf32>
    %101 = vector.shape_cast %98 : vector<9x32xf32> to vector<1x1x9x32xf32>
    tpu.vector_store %arg5[%c0_91, %c3, %c0_92, %c0_93], %101 {strides = array<i32>} : memref<1x9x9x32xf32, #tpu.memory_space<vmem>>, vector<1x1x9x32xf32>,
    %102 = vector.extract_strided_slice %85 {offsets = [64, 0], sizes = [9, 32], strides = [1, 1]} : vector<144x32xf32> to vector<9x32xf32>
    %c0_94 = arith.constant 0 : index
    %c4 = arith.constant 4 : index
    %c0_95 = arith.constant 0 : index
    %c0_96 = arith.constant 0 : index
    %103 = vector.load %arg5[%c0_94, %c4, %c0_95, %c0_96] : memref<1x9x9x32xf32, #tpu.memory_space<vmem>>, vector<1x1x9x32xf32>
    %104 = vector.shape_cast %103 : vector<1x1x9x32xf32> to vector<9x32xf32>
    %105 = vector.shape_cast %102 : vector<9x32xf32> to vector<1x1x9x32xf32>
    tpu.vector_store %arg5[%c0_94, %c4, %c0_95, %c0_96], %105 {strides = array<i32>} : memref<1x9x9x32xf32, #tpu.memory_space<vmem>>, vector<1x1x9x32xf32>,
    %106 = vector.extract_strided_slice %85 {offsets = [80, 0], sizes = [9, 32], strides = [1, 1]} : vector<144x32xf32> to vector<9x32xf32>
    %c0_97 = arith.constant 0 : index
    %c5 = arith.constant 5 : index
    %c0_98 = arith.constant 0 : index
    %c0_99 = arith.constant 0 : index
    %107 = vector.load %arg5[%c0_97, %c5, %c0_98, %c0_99] : memref<1x9x9x32xf32, #tpu.memory_space<vmem>>, vector<1x1x9x32xf32>
    %108 = vector.shape_cast %107 : vector<1x1x9x32xf32> to vector<9x32xf32>
    %109 = vector.shape_cast %106 : vector<9x32xf32> to vector<1x1x9x32xf32>
    tpu.vector_store %arg5[%c0_97, %c5, %c0_98, %c0_99], %109 {strides = array<i32>} : memref<1x9x9x32xf32, #tpu.memory_space<vmem>>, vector<1x1x9x32xf32>,
    %110 = vector.extract_strided_slice %85 {offsets = [96, 0], sizes = [9, 32], strides = [1, 1]} : vector<144x32xf32> to vector<9x32xf32>
    %c0_100 = arith.constant 0 : index
    %c6 = arith.constant 6 : index
    %c0_101 = arith.constant 0 : index
    %c0_102 = arith.constant 0 : index
    %111 = vector.load %arg5[%c0_100, %c6, %c0_101, %c0_102] : memref<1x9x9x32xf32, #tpu.memory_space<vmem>>, vector<1x1x9x32xf32>
    %112 = vector.shape_cast %111 : vector<1x1x9x32xf32> to vector<9x32xf32>
    %113 = vector.shape_cast %110 : vector<9x32xf32> to vector<1x1x9x32xf32>
    tpu.vector_store %arg5[%c0_100, %c6, %c0_101, %c0_102], %113 {strides = array<i32>} : memref<1x9x9x32xf32, #tpu.memory_space<vmem>>, vector<1x1x9x32xf32>,
    %114 = vector.extract_strided_slice %85 {offsets = [112, 0], sizes = [9, 32], strides = [1, 1]} : vector<144x32xf32> to vector<9x32xf32>
    %c0_103 = arith.constant 0 : index
    %c7 = arith.constant 7 : index
    %c0_104 = arith.constant 0 : index
    %c0_105 = arith.constant 0 : index
    %115 = vector.load %arg5[%c0_103, %c7, %c0_104, %c0_105] : memref<1x9x9x32xf32, #tpu.memory_space<vmem>>, vector<1x1x9x32xf32>
    %116 = vector.shape_cast %115 : vector<1x1x9x32xf32> to vector<9x32xf32>
    %117 = vector.shape_cast %114 : vector<9x32xf32> to vector<1x1x9x32xf32>
    tpu.vector_store %arg5[%c0_103, %c7, %c0_104, %c0_105], %117 {strides = array<i32>} : memref<1x9x9x32xf32, #tpu.memory_space<vmem>>, vector<1x1x9x32xf32>,
    %118 = vector.extract_strided_slice %85 {offsets = [128, 0], sizes = [9, 32], strides = [1, 1]} : vector<144x32xf32> to vector<9x32xf32>
    %c0_106 = arith.constant 0 : index
    %c8 = arith.constant 8 : index
    %c0_107 = arith.constant 0 : index
    %c0_108 = arith.constant 0 : index
    %119 = vector.load %arg5[%c0_106, %c8, %c0_107, %c0_108] : memref<1x9x9x32xf32, #tpu.memory_space<vmem>>, vector<1x1x9x32xf32>
    %120 = vector.shape_cast %119 : vector<1x1x9x32xf32> to vector<9x32xf32>
    %121 = vector.shape_cast %118 : vector<9x32xf32> to vector<1x1x9x32xf32>
    tpu.vector_store %arg5[%c0_106, %c8, %c0_107, %c0_108], %121 {strides = array<i32>} : memref<1x9x9x32xf32, #tpu.memory_space<vmem>>, vector<1x1x9x32xf32>,
    return
  }
  func.func @transform_0(%arg0: i32) -> (i32, i32, i32, i32) {
    %c0_i32 = arith.constant 0 : i32
    %c0_i32_0 = arith.constant 0 : i32
    %c0_i32_1 = arith.constant 0 : i32
    %c0_i32_2 = arith.constant 0 : i32
    return %arg0, %c0_i32, %c0_i32_0, %c0_i32_1 : i32, i32, i32, i32
  }
  func.func @transform_1(%arg0: i32) -> (i32, i32, i32) {
    %c0_i32 = arith.constant 0 : i32
    %c0_i32_0 = arith.constant 0 : i32
    %c0_i32_1 = arith.constant 0 : i32
    %c0_i32_2 = arith.constant 0 : i32
    return %c0_i32, %c0_i32_0, %c0_i32_1 : i32, i32, i32
  }
  func.func @transform_2(%arg0: i32) -> (i32, i32, i32) {
    %c0_i32 = arith.constant 0 : i32
    %c0_i32_0 = arith.constant 0 : i32
    %c0_i32_1 = arith.constant 0 : i32
    %c0_i32_2 = arith.constant 0 : i32
    return %c0_i32, %c0_i32_0, %c0_i32_1 : i32, i32, i32
  }
  func.func @transform_3(%arg0: i32) -> (i32, i32, i32, i32) {
    %c0_i32 = arith.constant 0 : i32
    %c0_i32_0 = arith.constant 0 : i32
    %c0_i32_1 = arith.constant 0 : i32
    %c0_i32_2 = arith.constant 0 : i32
    %c0_i32_3 = arith.constant 0 : i32
    return %c0_i32, %c0_i32_0, %c0_i32_1, %c0_i32_2 : i32, i32, i32, i32
  }
  func.func @transform_4(%arg0: i32) -> (i32, i32, i32, i32) {
    %c0_i32 = arith.constant 0 : i32
    %c0_i32_0 = arith.constant 0 : i32
    %c0_i32_1 = arith.constant 0 : i32
    %c0_i32_2 = arith.constant 0 : i32
    return %arg0, %c0_i32, %c0_i32_0, %c0_i32_1 : i32, i32, i32, i32
  }
}

</mosaic_0001>

<bundles_post_ra>
// kernel: tpu_custom_call.1
= control target key start
LH: loop header
LB: loop body
LE: loop exit
PB: predicated region body
PF: predicated region fallthrough
CT: control target
= control target key end

     0   :  { %9 = vsyncpa [#allocation4], 0  ;;  %s4928_s0 = inlined_call_operand.hbm [shape: f32[2,9,9,128], index: 0, kind: input, shape index: {}]   ;;  %s4929_s1 = inlined_call_operand.hbm [shape: f32[1,1,128], index: 1, kind: input, shape index: {}]   ;;  %s4930_s2 = inlined_call_operand.hbm [shape: f32[1,1,128], index: 2, kind: input, shape index: {}]   ;;  %s4931_s3 = inlined_call_operand.hbm [shape: bf16[3,3,128,32], index: 3, kind: input, shape index: {}]   ;;  %s4932_s4 = inlined_call_operand.hbm [shape: f32[2,9,9,32], index: 4, kind: output, shape index: {}]  }
   0x1   :  { %11 = vsyncpa [#allocation4 + $0x1], 0 }
   0x2   :  { %12 = vsyncpa [#allocation7], 0 }
   0x3   :  { %13 = vsyncpa [#allocation10], 0 }
   0x4   :  { %14 = vsyncpa [#allocation5], 0 }
   0x5   :  { %16 = vsyncpa [#allocation5 + $0x1], 0  ;;  %s4085_s15 = smov 0   ;;  %s4087_s16 = smov 0  }
   0x6   :  { %s4089_s17 = smov 0   ;;  %s4091_s18 = smov 0  }
   0x7 LB: > { %s4106_s19 = sadd.s32 4294967295, %s4044_s18   ;;  %s2671_s20 = sadd.s32 4294967294, %s4044_s18   ;;  %s4044_s18 = sphi %s4091_s18, %s4957_s18   ;;  %s4040_s17 = sphi %s4089_s17, %s4956_s17   ;;  %s4036_s16 = sphi %s4087_s16, %s4955_s16   ;;  %s4032_s15 = sphi %s4085_s15, %s4954_s15  }
   0x8   : > { %p42_p0 = scmp.ne.s32.totalorder %s4036_s16, %s4032_s15  ;;  %p4933_p1 = scmp.eq.s32.totalorder %s4106_s19, 0 }
   0x9   : > { %p135_p3 = scmp.eq.s32.totalorder %s2671_s20, 1  ;;  %p2672_p5 = scmp.ge.s32.totalorder %s4044_s18, 1 }
   0xa   : > { %p4115_p4 = por %p4933_p1, %p42_p0  ;;  %p142_p7 = scmp.lt.s32.totalorder %s4044_s18, 3 }
   0xb   : > { %p4120_p6 = por %p135_p3, %p42_p0  ;;  %s4046_s24 = smov [#allocation6]  }
   0xc   : > { %s4936_s21 = scalar_select %p4115_p4, 1, 0 }
   0xd   : > { %s4937_s22 = scalar_select %p4120_p6, 1, 0 }
   0xe   : > { %p4125_p8 = pnand %p2672_p5, %p142_p7  ;;  %s155_s25 = sshll.u32 %s4046_s24, 4  ;;  %s156_s25 = int_to_ptr.vmem [resolvable:$true] %s155_s25 }
   0xf   : > { %s4047_s26 = smov [#allocation8]   ;;  %s4048_s29 = smov [#allocation9]  }
  0x10   : > { %s4938_s23 = scalar_select %p4125_p8, 1, 0 }
  0x11   : > { %p3702_p10 = pneg %p4125_p8  ;;  %s166_s27 = sshll.u32 %s4047_s26, 4  ;;  %s4138_s27 = int_to_ptr.vmem [resolvable:$true] %s166_s27 }
  0x12   : > { %s176_s30 = sshll.u32 %s4048_s29, 4  ;;  %s3856_s7 = scalar_lea.hbm %s4929_s1, 16  ;;  %s4140_s30 = int_to_ptr.vmem [resolvable:$true] %s176_s30 }
  0x13   : > { %p4134_p11 = pnand %p3702_p10, %p4933_p1  ;;  %p3857_p12 = scmp.ne.s32.totalorder %s4929_s1, %s3856_s7 }
  0x14   : > { %p3863_p5 = scmp.lt.u32.totalorder %s3856_s7, %s4929_s1 }
  0x15   : > { %p4150_p13 = pneg %p4134_p11 }
  0x17   : > { %p3859_p0 = pnand %p4150_p13, %p3857_p12 }
  0x19   : > { %p3860_p3 = pneg %p3859_p0 }
  0x1b   : > { %p3865_p7 = pnand %p3863_p5, %p3860_p3 }
  0x1d   : > { %3868 = shalt.err (!%p3865_p7)
}
  0x1e   : > { %s3869_s13 = scalar_lea.vmem %s156_s25, 16  ;;  %s3876_s14 = scalar_lea.vmem %s156_s25, 32 }
  0x1f   : > { %p3870_p10 = scmp.ne.s32.totalorder %s156_s25, %s3869_s13  ;;  %p3877_p2 = scmp.lt.s32.totalorder %s156_s25, %s156_s25 }
  0x20   : > { %p3878_p6 = scmp.lt.s32.totalorder %s3876_s14, %s3869_s13 }
  0x21   : > { %p3872_p9 = pnand %p3870_p10, %p4150_p13 }
  0x22   : > { %p3879_p4 = por %p3878_p6, %p3877_p2 }
  0x23   : > { %p3873_p1 = pneg %p3872_p9 }
  0x25   : > { %p3880_p8 = pnand %p3879_p4, %p3873_p1 }
  0x27   : > { %3883 = shalt.err (!%p3880_p8)
}
  0x28   : > { %3705 = dma.hbm_to_vmem [thread:$0]  (!%p4134_p11), %s4929_s1, 16, %s156_s25, [#allocation7]  }
  0x29   : > { %s3884_s5 = scalar_lea.hbm %s4930_s2, 16 }
  0x2a   : > { %p3885_p9 = scmp.ne.s32.totalorder %s4930_s2, %s3884_s5  ;;  %p3891_p1 = scmp.lt.u32.totalorder %s3884_s5, %s4930_s2 }
  0x2c   : > { %p3887_p12 = pnand %p3885_p9, %p4150_p13 }
  0x2e   : > { %p3888_p2 = pneg %p3887_p12 }
  0x30   : > { %p3893_p4 = pnand %p3891_p1, %p3888_p2 }
  0x32   : > { %3896 = shalt.err (!%p3893_p4)
}
  0x33   : > { %s3897_s25 = scalar_lea.vmem %s4138_s27, 16  ;;  %s3904_s11 = scalar_lea.vmem %s4138_s27, 32 }
  0x34   : > { %p3898_p6 = scmp.ne.s32.totalorder %s4138_s27, %s3897_s25  ;;  %p3905_p3 = scmp.lt.s32.totalorder %s4138_s27, %s4138_s27 }
  0x35   : > { %p3906_p5 = scmp.lt.s32.totalorder %s3904_s11, %s3897_s25 }
  0x36   : > { %p3900_p8 = pnand %p3898_p6, %p4150_p13 }
  0x37   : > { %p3907_p7 = por %p3906_p5, %p3905_p3 }
  0x38   : > { %p3901_p0 = pneg %p3900_p8 }
  0x3a   : > { %p3908_p10 = pnand %p3907_p7, %p3901_p0 }
  0x3c   : > { %3911 = shalt.err (!%p3908_p10)
}
  0x3d   : > { %3708 = dma.hbm_to_vmem [thread:$0]  (!%p4134_p11), %s4930_s2, 16, %s4138_s27, [#allocation7]  }
  0x3e   : > { %s3912_s24 = scalar_lea.hbm %s4931_s3, 9216 }
  0x3f   : > { %p3913_p9 = scmp.ne.s32.totalorder %s4931_s3, %s3912_s24  ;;  %p3919_p1 = scmp.lt.u32.totalorder %s3912_s24, %s4931_s3 }
  0x41   : > { %p3915_p12 = pnand %p3913_p9, %p4150_p13 }
  0x43   : > { %p3916_p2 = pneg %p3915_p12 }
  0x45   : > { %p3921_p4 = pnand %p3919_p1, %p3916_p2 }
  0x47   : > { %3924 = shalt.err (!%p3921_p4)
}
  0x48   : > { %s3925_s27 = scalar_lea.vmem %s4140_s30, 9216  ;;  %p3933_p3 = scmp.lt.s32.totalorder %s4140_s30, %s4140_s30 }
  0x49   : > { %p3926_p6 = scmp.ne.s32.totalorder %s4140_s30, %s3925_s27  ;;  %p3934_p5 = scmp.lt.s32.totalorder %s3925_s27, %s3925_s27 }
  0x4b   : > { %p3928_p8 = pnand %p3926_p6, %p4150_p13  ;;  %p3935_p7 = por %p3934_p5, %p3933_p3 }
  0x4d   : > { %p3929_p0 = pneg %p3928_p8 }
  0x4f   : > { %p3936_p10 = pnand %p3935_p7, %p3929_p0 }
  0x51   : > { %3939 = shalt.err (!%p3936_p10)
}
  0x52   : > { %s4049_s7 = smov 64   ;;  %s4050_s10 = smov 4  }
  0x53   : > { %3711 = dma.hbm_to_vmem [thread:$0]  (!%p4134_p11), %s4931_s3, 9216, %s4140_s30, [#allocation10], %s4049_s7, %s4049_s7, %s4050_s10  }
  0x54   : > { %s4214_s25 = sadd.s32 1, %s4044_s18   ;;  %s29_s12 = sadd.s32 1, %s4040_s17 }
  0x55   : > { %s26_s11 = ssub.s32 %s4044_s18, %s4214_s25  ;;  %p36_p9 = scmp.ne.s32.totalorder %s4040_s17, %s4036_s16 }
  0x56   : > { %p27_p13 = scmp.eq.s32.totalorder %s26_s11, 0  ;;  %p37_p12 = scmp.eq.s32.totalorder %s4044_s18, 0 }
  0x57   : > { %p3723_p2 = scmp.lt.s32.totalorder %s4044_s18, 2  ;;  %p4941_p4 = scmp.eq.s32.totalorder %s4106_s19, 1 }
  0x58   : > { %s4224_s13 = scalar_select %p27_p13, %s4040_s17, %s29_s12  }
  0x59   : > { %p38_p1 = por %p37_p12, %p36_p9  ;;  %p4228_p6 = por %p4941_p4, %p36_p9 }
  0x5a   : > { %s190_s28 = sand.u32 1, %s4040_s17   ;;  %s3683_s20 = smul.u32 2304, %s4044_s18 }
  0x5b   : > { %s3682_s30 = smul.u32 144, %s190_s28  ;;  %p4239_p11 = pnand %p3723_p2, %p38_p1 }
  0x5c   : > { %s4237_s29 = scalar_lea.hbm %s4928_s0, %s3683_s20  ;;  %s4245_s7 = scalar_lea.sflag [#allocation4], %s190_s28 }
  0x5d   : > { %s194_s6 = scalar_lea.vmem [#allocation3], %s3682_s30  ;;  %s3940_s10 = scalar_lea.hbm %s4237_s29, 2304 }
  0x5e   : > { %s201_s27 = sshll.u32 %s194_s6, 4  ;;  %p3941_p8 = scmp.ne.s32.totalorder %s4237_s29, %s3940_s10  ;;  %s4243_s27 = int_to_ptr.vmem [resolvable:$true] %s201_s27 }
  0x5f   : > { %p3942_p0 = pneg %p4239_p11  ;;  %s3945_s11 = scalar_lea.hbm %s4928_s0, 4608 }
  0x60   : > { %p3946_p7 = scmp.lt.u32.totalorder %s4237_s29, %s4928_s0  ;;  %p3947_p10 = scmp.lt.u32.totalorder %s3945_s11, %s3940_s10 }
  0x61   : > { %p3943_p3 = pnand %p3942_p0, %p3941_p8  ;;  %p3949_p9 = scmp.lt.u32.totalorder %s3940_s10, %s4237_s29 }
  0x62   : > { %p3948_p13 = por %p3947_p10, %p3946_p7 }
  0x63   : > { %p3944_p5 = pneg %p3943_p3 }
  0x64   : > { %p3950_p12 = por %p3949_p9, %p3948_p13 }
  0x66   : > { %p3951_p2 = pnand %p3950_p12, %p3944_p5 }
  0x68   : > { %3954 = shalt.err (!%p3951_p2)
}
  0x69   : > { %s3955_s28 = scalar_lea.vmem %s4243_s27, 2304  ;;  %s4051_s30 = smov [#allocation3]  }
  0x6a   : > { %p3956_p1 = scmp.ne.s32.totalorder %s4243_s27, %s3955_s28  ;;  %s3960_s24 = sshll.u32 %s4051_s30, 4  ;;  %s3961_s24 = int_to_ptr.vmem [resolvable:$false] %s3960_s24 }
  0x6b   : > { %s3962_s26 = scalar_lea.vmem %s3961_s24, 4608  ;;  %p3963_p3 = scmp.lt.s32.totalorder %s4243_s27, %s3961_s24 }
  0x6c   : > { %p3958_p4 = pnand %p3956_p1, %p3942_p0  ;;  %p3964_p7 = scmp.lt.s32.totalorder %s3962_s26, %s3955_s28 }
  0x6e   : > { %p3959_p8 = pneg %p3958_p4  ;;  %p3965_p10 = por %p3964_p7, %p3963_p3 }
  0x70   : > { %p3966_p13 = pnand %p3965_p10, %p3959_p8 }
  0x72   : > { %3969 = shalt.err (!%p3966_p13)
}
  0x73   : > { %s4052_s6 = smov 128   ;;  %s4053_s10 = smov 8  }
  0x74   : > { %3715 = dma.hbm_to_vmem [thread:$0]  (!%p4239_p11), %s4237_s29, 2304, %s4243_s27, %s4245_s7, %s4052_s6, %s4052_s6, %s4053_s10  }
  0x75   : > { %p4944_p0 = scmp.ne.s32.totalorder %s4938_s23, 0 }
  0x76   : > { %s4276_s8 = sand.u32 (!%p4944_p0), 1, %s4036_s16   ;;  %p4945_p5 = scmp.ne.s32.totalorder (!%p4944_p0), %s4936_s21, 0 }
  0x77   : > { %213 = sbr.rel (%p4944_p0) target bundleno = 720 (0x2d0), region = 36  ;;  %s216_s11 = scalar_lea.sflag (!%p4944_p0), [#allocation4], %s4276_s8 }
  0x78   : > { %s3684_s9 = smul.u32 (!%p4944_p0), 144, %s4276_s8 }
  0x7a   : > { %s4282_s12 = scalar_lea.vmem (!%p4944_p0), [#allocation3], %s3684_s9 }
  0x7e   : > { %4015 = dma.done.wait (%p4945_p5), %s216_s11, 2304  }
  0x7f   : > { %4017 = vsyncadd (%p4945_p5), %s216_s11, 4294964992  ;;  %p4946_p11 = scmp.eq.s32.totalorder %s4106_s19, 0 }
  0x81   : > { %4019 = dma.done.wait (%p4946_p11), [#allocation7], 32   ;;  %p4947_p9 = pmov %p4946_p11 }
  0x83   : > { %4021 = vsyncadd (%p4947_p9), [#allocation7], 4294967264  ;;  %p4948_p12 = pmov %p4947_p9 }
  0x84   : > { %p4949_p2 = pmov %p4947_p9 }
  0x85   : > { %4023 = dma.done.wait (%p4948_p12), [#allocation10], 9216  }
  0x86   : > { %4025 = vsyncadd (%p4949_p2), [#allocation10], 4294958080  ;;  %v4054_v0 = vmov 0.0   ;;  %v4055_v1 = vmov 0   ;;  %vm4056_vm0 = vmmov 0   ;;  %v3772_v2 = vld [vmem:[#allocation9 + $0x40] sm:$0xff]  }
  0x87   : > { %2928 = vmatprep.subr.bf16.mxu1 %v4054_v0  ;;  %3136 = vmatprep.subr.bf16.mxu0 %v4054_v0  ;;  %352 = vst [vmem:[#allocation2] sm:$0xff] %v4055_v1  ;;  %353 = vst [vmem:[#allocation2 + $0x8] sm:$0xff] %v4055_v1  ;;  %v3773_v3 = vld [vmem:[#allocation9 + $0x100] sm:$0xff]   ;;  %v3774_v4 = vld [vmem:[#allocation9 + $0x48] sm:$0xff]   ;;  %vm372_vm1 = vcmask 1044480   ;;  %vm929_vm5 = vcmask 1046528  }
  0x88   : > { %354 = vst [vmem:[#allocation2 + $0x10] sm:$0xff] %v4055_v1  ;;  %355 = vst [vmem:[#allocation2 + $0x18] sm:$0xff] %v4055_v1  ;;  %2944 = vmatprep.mubr.msk.bf16.mxu1 %vm4056_vm0, %v4054_v0  ;;  %3152 = vmatprep.mubr.msk.bf16.mxu0 %vm4056_vm0, %v4054_v0  ;;  %v3775_v5 = vld [vmem:[#allocation9 + $0x108] sm:$0xff]   ;;  %v3776_v6 = vld [vmem:[#allocation9 + $0x50] sm:$0xff]   ;;  %vm373_vm2 = vsmask.f32 7938 }
  0x89   : > { %356 = vst [vmem:[#allocation2 + $0x20] sm:$0xff] %v4055_v1  ;;  %357 = vst [vmem:[#allocation2 + $0x28] sm:$0xff] %v4055_v1  ;;  %2929 = vmatpush3.bf16.msra.mxu1 %v3772_v2  ;;  %3137 = vmatpush3.bf16.msra.mxu0 %v3773_v3  ;;  %v3777_v7 = vld [vmem:[#allocation9 + $0x110] sm:$0xff]   ;;  %v3778_v8 = vld [vmem:[#allocation9 + $0x58] sm:$0xff]   ;;  %vm509_vm4 = vsmask.f32 7424 }
  0x8a   : > { %358 = vst [vmem:[#allocation2 + $0x30] sm:$0xff] %v4055_v1  ;;  %359 = vst [vmem:[#allocation2 + $0x38] sm:$0xff] %v4055_v1  ;;  %2930 = vmatprep.subr.bf16.mxu1 %v4054_v0  ;;  %3138 = vmatprep.subr.bf16.mxu0 %v4054_v0  ;;  %v3779_v9 = vld [vmem:[#allocation9 + $0x118] sm:$0xff]   ;;  %v3780_v10 = vld [vmem:[#allocation9 + $0x60] sm:$0xff]   ;;  %vm2527_vm6 = vcmask 261120   ;;  %vm2529_vm7 = vcmask 253952  }
  0x8b   : > { %360 = vst [vmem:[#allocation2 + $0x40] sm:$0xff] %v4055_v1  ;;  %361 = vst [vmem:[#allocation2 + $0x48] sm:$0xff] %v4055_v1  ;;  %v3781_v11 = vld [vmem:[#allocation9 + $0x120] sm:$0xff]   ;;  %v4324_v14 = vld [vmem:[#allocation6] ss:$0 sm:$0xff]  ;;  %s4839_s21 = scalar_lea.vmem [#allocation11], %s3684_s9 }
  0x8c   : > { %362 = vst [vmem:[#allocation2 + $0x50] sm:$0xff] %v4055_v1  ;;  %363 = vst [vmem:[#allocation2 + $0x58] sm:$0xff] %v4055_v1  ;;  %v257_v12 = vld [vmem:[%s4282_s12] sm:$0xff]  ;;  %v258_v13 = vld [vmem:[%s4282_s12 + $0x8] sm:$0x1]  ;;  %s3685_s23 = smul.u32 2304, %s4106_s19 }
  0x8d   : > { %2931 = vmatpush3.bf16.msra.mxu1 %v3774_v4  ;;  %3139 = vmatpush3.bf16.msra.mxu0 %v3775_v5  ;;  %v282_v15 = vmul.f32 %v4324_v14, %v257_v12  ;;  %v283_v16 = vmul.f32 %v4324_v14, %v258_v13  ;;  %v4328_v17 = vld [vmem:[#allocation8] ss:$0 sm:$0xff]  ;;  %v3782_v19 = vld [vmem:[#allocation9 + $0x68] sm:$0xff]   ;;  %v260_v20 = vld [vmem:[%s4282_s12 + $0x18] sm:$0x1]  ;;  %s2569_s29 = sshll.u32 %s4839_s21, 4  ;;  %s4882_s29 = int_to_ptr.vmem [resolvable:$true] %s2569_s29 }
  0x8e   : > { %2932 = vmatprep.subr.bf16.mxu1 %v4054_v0  ;;  %3140 = vmatprep.subr.bf16.mxu0 %v4054_v0  ;;  %v259_v18 = vld [vmem:[%s4282_s12 + $0x10] sm:$0xff]  ;;  %v285_v25 = vmul.f32 %v4324_v14, %v260_v20  ;;  %v261_v30 = vld [vmem:[%s4282_s12 + $0x20] sm:$0xff]  ;;  %v262_v33 = vld [vmem:[%s4282_s12 + $0x28] sm:$0x1]  ;;  %s4878_s7 = scalar_lea.hbm %s4932_s4, %s3685_s23  ;;  %s2556_s19 = scalar_lea.sflag [#allocation5], %s4276_s8 }
  0x8f   : > { %v284_v21 = vmul.f32 %v4324_v14, %v259_v18  ;;  %v3783_v22 = vld [vmem:[#allocation9 + $0x128] sm:$0xff]   ;;  %v307_v23 = vadd.f32 %v4328_v17, %v282_v15  ;;  %v308_v24 = vadd.f32 %v4328_v17, %v283_v16  ;;  %v3784_v31 = vld [vmem:[#allocation9 + $0x70] sm:$0xff]   ;;  %v286_v34 = vmul.f32 %v4324_v14, %v261_v30  ;;  %v3786_v40 = vld [vmem:[#allocation9 + $0x78] sm:$0xff]   ;;  %s3970_s20 = scalar_lea.vmem %s4882_s29, 2304  ;;  %s4057_s28 = smov [#allocation11]  }
  0x90   : > { %v310_v29 = vadd.f32 %v4328_v17, %v285_v25  ;;  %v3785_v35 = vld [vmem:[#allocation9 + $0x130] sm:$0xff]   ;;  %v287_v38 = vmul.f32 %v4324_v14, %v262_v33  ;;  %v3787_v46 = vld [vmem:[#allocation9 + $0x138] sm:$0xff]   ;;  %v375_v47 = vld [vmem:[#allocation2 + $0x8] sm:$0x1f]  ;;  %p3971_p1 = scmp.ne.s32.totalorder %s4882_s29, %s3970_s20  ;;  %s3974_s30 = sshll.u32 %s4057_s28, 4  ;;  %s3975_s30 = int_to_ptr.vmem [resolvable:$false] %s3974_s30 }
  0x91   : > { %2933 = vmatpush3.bf16.msra.mxu1 %v3776_v6  ;;  %3141 = vmatpush3.bf16.msra.mxu0 %v3777_v7  ;;  %v309_v26 = vadd.f32 %v4328_v17, %v284_v21  ;;  %v325_v27 = vmax.f32 %v307_v23, 0.0  ;;  %v326_v28 = vmax.f32 %v308_v24, 0.0  ;;  %v311_v39 = vadd.f32 %v4328_v17, %v286_v34  ;;  %v263_v45 = vld [vmem:[%s4282_s12 + $0x30] sm:$0xff]  ;;  %v264_v49 = vld [vmem:[%s4282_s12 + $0x38] sm:$0x1]  ;;  %vm4354_vm3 = vmand %vm372_vm1, %vm373_vm2  ;;  %s3976_s24 = scalar_lea.vmem %s3975_s30, 4608  ;;  %p3977_p3 = scmp.lt.s32.totalorder %s4882_s29, %s3975_s30 }
  0x92   : > { %2934 = vmatprep.subr.bf16.mxu1 %v4054_v0  ;;  %3142 = vmatprep.subr.bf16.mxu0 %v4054_v0  ;;  %v328_v37 = vmax.f32 %v310_v29, 0.0  ;;  %v312_v44 = vadd.f32 %v4328_v17, %v287_v38  ;;  %v288_v50 = vmul.f32 %v4324_v14, %v263_v45  ;;  %v289_v56 = vmul.f32 %v4324_v14, %v264_v49  ;;  %v386_v61 = vld [vmem:[#allocation2 + $0x10] sm:$0x1f]  ;;  %v266_v3 = vld [vmem:[%s4282_s12 + $0x48] sm:$0x1]  ;;  %v3799_v52 = vld [vmem:[#allocation9 + $0x178] sm:$0xff]   ;;  %p3972_p4 = pnand %p3971_p1, %p4228_p6  ;;  %p3978_p7 = scmp.lt.s32.totalorder %s3976_s24, %s3970_s20 }
  0x93   : > { %v327_v32 = vmax.f32 %v309_v26, 0.0  ;;  %v343_v36 = vpack.c.bf16 %v326_v28, %v325_v27  ;;  %v329_v48 = vmax.f32 %v311_v39, 0.0  ;;  %v265_v2 = vld [vmem:[%s4282_s12 + $0x40] sm:$0xff]  ;;  %v397_v13 = vld [vmem:[#allocation2 + $0x18] sm:$0x1f]  ;;  %v267_v21 = vld [vmem:[%s4282_s12 + $0x50] sm:$0xff] }
  0x94   : > { %v330_v55 = vmax.f32 %v312_v44, 0.0  ;;  %v313_v57 = vadd.f32 %v4328_v17, %v288_v50  ;;  %v314_v62 = vadd.f32 %v4328_v17, %v289_v56  ;;  %v268_v26 = vld [vmem:[%s4282_s12 + $0x58] sm:$0x1]  ;;  %v292_v28 = vmul.f32 %v4324_v14, %v267_v21  ;;  %p3973_p8 = pneg %p3972_p4  ;;  %p3979_p10 = por %p3978_p7, %p3977_p3 }
  0x95   : > { %2935 = vmatpush3.bf16.msra.mxu1 %v3778_v8  ;;  %3143 = vmatpush3.bf16.msra.mxu0 %v3779_v9  ;;  %v365_v41 = vshrl.u32 %v343_v36, 16  ;;  %v368_v42 = vshll.u32 %v343_v36, 16  ;;  %v344_v43 = vpack.c.bf16 %v328_v37, %v327_v32  ;;  %v290_v9 = vmul.f32 %v4324_v14, %v265_v2  ;;  %v419_v49 = vld [vmem:[#allocation2 + $0x28] sm:$0x1f]  ;;  %v271_v2 = vld [vmem:[%s4282_s12 + $0x70] sm:$0xff] }
  0x96   : > { %2936 = vmatprep.subr.bf16.mxu1 %v4054_v0  ;;  %3144 = vmatprep.subr.bf16.mxu0 %v4054_v0  ;;  %v345_v60 = vpack.c.bf16 %v330_v55, %v329_v48  ;;  %v331_v63 = vmax.f32 %v313_v57, 0.0  ;;  %v332_v8 = vmax.f32 %v314_v62, 0.0  ;;  %v293_v29 = vmul.f32 %v4324_v14, %v268_v26  ;;  %v3792_v57 = vld [vmem:[#allocation9 + $0x8] sm:$0xff]   ;;  %p3980_p13 = pnand %p3979_p10, %p3973_p8 }
  0x97   : > { %v367_v51 = vrot.slane %v365_v41, 7  ;;  %v379_v53 = vshrl.u32 %v344_v43, 16  ;;  %v382_v54 = vshll.u32 %v344_v43, 16  ;;  %v315_v16 = vadd.f32 %v4328_v17, %v290_v9  ;;  %v269_v43 = vld [vmem:[%s4282_s12 + $0x60] sm:$0xff] }
  0x98   : > { %v390_v6 = vshrl.u32 %v345_v60, 16  ;;  %v393_v7 = vshll.u32 %v345_v60, 16  ;;  %v346_v15 = vpack.c.bf16 %v332_v8, %v331_v63  ;;  %v317_v33 = vadd.f32 %v4328_v17, %v292_v28  ;;  %v270_v63 = vld [vmem:[%s4282_s12 + $0x68] sm:$0x1] }
  0x99   : > { %2937 = vmatpush3.bf16.msra.mxu1 %v3780_v10  ;;  %3145 = vmatpush3.bf16.msra.mxu0 %v3781_v11  ;;  %v370_v58 = vor.u32 %v368_v42, %v367_v51  ;;  %v381_v59 = vrot.slane %v379_v53, 7  ;;  %v291_v10 = vmul.f32 %v4324_v14, %v266_v3  ;;  %v333_v24 = vmax.f32 %v315_v16, 0.0 }
  0x9a   : > { %2938 = vmatprep.subr.bf16.mxu1 %v4054_v0  ;;  %3146 = vmatprep.subr.bf16.mxu0 %v4054_v0  ;;  %v392_v12 = vrot.slane %v390_v6, 7  ;;  %v404_v23 = vshll.u32 %v346_v15, 16  ;;  %v318_v34 = vadd.f32 %v4328_v17, %v293_v29  ;;  %v335_v41 = vmax.f32 %v317_v33, 0.0  ;;  %v273_v6 = vld [vmem:[%s4282_s12 + $0x80] sm:$0xff] }
  0x9b   : > { %v376_v4 = vsel %vm4354_vm3, %v370_v58, %v375_v47  ;;  %v384_v5 = vor.u32 %v382_v54, %v381_v59  ;;  %v316_v18 = vadd.f32 %v4328_v17, %v291_v10  ;;  %v3789_v47 = vld [vmem:[#allocation9 + $0x140] sm:$0xff]   ;;  %v294_v58 = vmul.f32 %v4324_v14, %v269_v43 }
  0x9c   : > { %377 = vst [vmem:[#allocation2 + $0x8] sm:$0x1f] %v376_v4  ;;  %v395_v20 = vor.u32 %v393_v7, %v392_v12  ;;  %v336_v42 = vmax.f32 %v318_v34, 0.0  ;;  %v3790_v7 = vld [vmem:[#allocation9 + $0x148] sm:$0xff]   ;;  %v3795_v12 = vld [vmem:[#allocation9 + $0x10] sm:$0xff]  }
  0x9d   : > { %2939 = vmatpush3.bf16.msra.mxu1 %v3782_v19  ;;  %3147 = vmatpush3.bf16.msra.mxu0 %v3783_v22  ;;  %v387_v11 = vsel %vm4354_vm3, %v384_v5, %v386_v61  ;;  %v515_v19 = vrot.slane %v4055_v1, 1  ;;  %v401_v22 = vshrl.u32 %v346_v15, 16  ;;  %v334_v25 = vmax.f32 %v316_v18, 0.0  ;;  %v408_v1 = vld [vmem:[#allocation2 + $0x20] sm:$0x1f] }
  0x9e   : > { %2940 = vmatprep.subr.bf16.mxu1 %v4054_v0  ;;  %3148 = vmatprep.subr.bf16.mxu0 %v4054_v0  ;;  %388 = vst [vmem:[#allocation2 + $0x10] sm:$0x1f] %v387_v11  ;;  %v398_v27 = vsel %vm4354_vm3, %v395_v20, %v397_v13  ;;  %v348_v53 = vpack.c.bf16 %v336_v42, %v335_v41  ;;  %v272_v5 = vld [vmem:[%s4282_s12 + $0x78] sm:$0x1]  ;;  %v430_v13 = vld [vmem:[#allocation2 + $0x30] sm:$0x1f] }
  0x9f   : > { %399 = vst [vmem:[#allocation2 + $0x18] sm:$0x1f] %v398_v27  ;;  %v403_v30 = vrot.slane %v401_v22, 7  ;;  %v295_v15 = vmul.f32 %v4324_v14, %v270_v63  ;;  %v319_v16 = vadd.f32 %v4328_v17, %v294_v58  ;;  %v296_v18 = vmul.f32 %v4324_v14, %v271_v2  ;;  %v3793_v42 = vld [vmem:[#allocation9 + $0x158] sm:$0xff]   ;;  %v3794_v58 = vld [vmem:[#allocation9 + $0x160] sm:$0xff]  }
  0xa0   : > { %v423_v61 = vshrl.u32 %v348_v53, 16  ;;  %v426_v62 = vshll.u32 %v348_v53, 16  ;;  %v297_v21 = vmul.f32 %v4324_v14, %v272_v5  ;;  %v298_v22 = vmul.f32 %v4324_v14, %v273_v6  ;;  %v452_v6 = vld [vmem:[#allocation2 + $0x40] sm:$0x1f] }
  0xa1   : > { %2941 = vmatpush3.bf16.msra.mxu1 %v3784_v31  ;;  %3149 = vmatpush3.bf16.msra.mxu0 %v3785_v35  ;;  %v347_v31 = vpack.c.bf16 %v334_v25, %v333_v24  ;;  %v406_v37 = vor.u32 %v404_v23, %v403_v30  ;;  %v320_v24 = vadd.f32 %v4328_v17, %v295_v15  ;;  %v337_v25 = vmax.f32 %v319_v16, 0.0  ;;  %v3791_v30 = vld [vmem:[#allocation9 + $0x150] sm:$0xff]  }
  0xa2   : > { %2942 = vmatprep.subr.bf16.mxu1 %v4054_v0  ;;  %3150 = vmatprep.subr.bf16.mxu0 %v4054_v0  ;;  %v425_v10 = vrot.slane %v423_v61, 7  ;;  %v322_v33 = vadd.f32 %v4328_v17, %v297_v21  ;;  %v3804_v16 = vld [vmem:[#allocation9 + $0x30] sm:$0xff]  }
  0xa3   : > { %v4381_v32 = vld [vmem:[#allocation2 + $0x8] sm:$0xff]  ;;  %v412_v38 = vshrl.u32 %v347_v31, 16  ;;  %v409_v48 = vsel %vm4354_vm3, %v406_v37, %v408_v1  ;;  %v321_v1 = vadd.f32 %v4328_v17, %v296_v18 }
  0xa4   : > { %v518_v35 = vshll.u32 %v4381_v32, 16  ;;  %v1346_v36 = vshrl.u32 %v4381_v32, 16  ;;  %410 = vst [vmem:[#allocation2 + $0x20] sm:$0x1f] %v409_v48  ;;  %v428_v20 = vor.u32 %v426_v62, %v425_v10  ;;  %v3802_v62 = vld [vmem:[#allocation9 + $0x28] sm:$0xff]  }
  0xa5   : > { %2943 = vmatpush3.bf16.msra.mxu1 %v3786_v40  ;;  %3151 = vmatpush3.bf16.msra.mxu0 %v3787_v46  ;;  %v4387_v39 = vld [vmem:[#allocation2 + $0x10] sm:$0xff]  ;;  %v415_v40 = vshll.u32 %v347_v31, 16  ;;  %v3788_v46 = vld [vmem:[#allocation9] sm:$0xff]   ;;  %v414_v51 = vrot.slane %v412_v38, 7  ;;  %v338_v31 = vmax.f32 %v320_v24, 0.0  ;;  %v339_v38 = vmax.f32 %v321_v1, 0.0 }
  0xa6   : > { %2980 = vmatprep.subr.bf16.mxu1 %v4054_v0  ;;  %3188 = vmatprep.subr.bf16.mxu0 %v4054_v0  ;;  %v520_v44 = vrot.slane %v518_v35, 1  ;;  %v1353_v45 = vshll.u32 %v4387_v39, 16  ;;  %v1357_v50 = vshrl.u32 %v4387_v39, 16  ;;  %v4396_v59 = vld [vmem:[#allocation2 + $0x18] sm:$0xff]  ;;  %v431_v29 = vsel %vm4354_vm3, %v428_v20, %v430_v13  ;;  %v1601_v21 = vld [vmem:[#allocation2 + $0x8] sm:$0xfe] }
  0xa7   : > { %v417_v60 = vor.u32 %v415_v40, %v414_v51  ;;  %v1361_v4 = vshll.u32 %v4396_v59, 16  ;;  %v1365_v27 = vshrl.u32 %v4396_v59, 16  ;;  %432 = vst [vmem:[#allocation2 + $0x30] sm:$0x1f] %v431_v29  ;;  %v3798_v35 = vld [vmem:[#allocation9 + $0x18] sm:$0xff]   ;;  %v349_v37 = vpack.c.bf16 %v338_v31, %v337_v25  ;;  %v3797_v20 = vld [vmem:[#allocation9 + $0x170] sm:$0xff]  }
  0xa8   : > { %v521_v54 = vsel %vm509_vm4, %v515_v19, %v520_v44  ;;  %v1351_v55 = vor.u32 %v1346_v36, %v520_v44  ;;  %v1355_v56 = vrot.slane %v1353_v45, 1  ;;  %v274_v19 = vld [vmem:[%s4282_s12 + $0x88] sm:$0x1]  ;;  %v323_v36 = vadd.f32 %v4328_v17, %v298_v22  ;;  %v3806_v22 = vld [vmem:[#allocation9 + $0x38] sm:$0xff]  }
  0xa9   : > { %2945 = vmatmul.mubr.bf16.vlgmr.msra.gmra.mrb[0].mxu1 %v521_v54  ;;  %v420_v9 = vsel %vm4354_vm3, %v417_v60, %v419_v49  ;;  %v4411_v11 = vrot.slane %v1361_v4, 1  ;;  %v299_v34 = vmul.f32 %v4324_v14, %v274_v19  ;;  %v340_v40 = vmax.f32 %v322_v33, 0.0  ;;  %v3800_v49 = vld [vmem:[#allocation9 + $0x20] sm:$0xff]   ;;  %v441_v51 = vld [vmem:[#allocation2 + $0x38] sm:$0x1f]  ;;  %v3796_v4 = vld [vmem:[#allocation9 + $0x168] sm:$0xff]  }
  0xaa   : > { %v1356_v3 = vsel %vm509_vm4, %v1351_v55, %v1355_v56  ;;  %2981 = vmatpush3.bf16.msra.mxu1 %v3788_v46  ;;  %2948 = vmatprep.mubr.msk.bf16.mxu1 %vm4056_vm0, %v4054_v0  ;;  %v1359_v8 = vor.u32 %v1357_v50, %v1355_v56  ;;  %421 = vst [vmem:[#allocation2 + $0x28] sm:$0x1f] %v420_v9  ;;  %v341_v14 = vmax.f32 %v323_v36, 0.0  ;;  %v434_v46 = vshrl.u32 %v349_v37, 16  ;;  %v3801_v31 = vld [vmem:[#allocation9 + $0x180] sm:$0xff]   ;;  %v3803_v36 = vld [vmem:[#allocation9 + $0x188] sm:$0xff]  }
  0xab   : > { %3153 = vmatmul.mubr.bf16.vlgmr.msra.gmra.mrb[0].mxu0 %v1356_v3  ;;  %2982 = vmatprep.subr.bf16.mxu1 %v4054_v0  ;;  %v4420_v23 = vld [vmem:[#allocation2 + $0x20] sm:$0xff]  ;;  %v324_v41 = vadd.f32 %v4328_v17, %v299_v34  ;;  %v1367_v43 = vor.u32 %v1365_v27, %v4411_v11  ;;  %v350_v48 = vpack.c.bf16 %v340_v40, %v339_v38  ;;  %v1629_v25 = vrot.slane %v1601_v21, 1 }
  0xac   : > { %3189 = vmatpush3.bf16.msra.mxu0 %v3789_v47  ;;  %3156 = vmatprep.mubr.msk.bf16.mxu0 %vm4056_vm0, %v4054_v0  ;;  %v1364_v26 = vsel %vm509_vm4, %v1359_v8, %v4411_v11  ;;  %v1369_v28 = vshll.u32 %v4420_v23, 16  ;;  %v437_v47 = vshll.u32 %v349_v37, 16  ;;  %v436_v50 = vrot.slane %v434_v46, 7  ;;  %v3807_v46 = vld [vmem:[#allocation9 + $0x198] sm:$0xff]  }
  0xad   : > { %3190 = vmatprep.subr.bf16.mxu0 %v4054_v0  ;;  %v342_v17 = vmax.f32 %v324_v41, 0.0  ;;  %v445_v54 = vshrl.u32 %v350_v48, 16  ;;  %v448_v55 = vshll.u32 %v350_v48, 16  ;;  %v1373_v60 = vshrl.u32 %v4420_v23, 16  ;;  %v3805_v41 = vld [vmem:[#allocation9 + $0x190] sm:$0xff]  }
  0xae   : > { %2983 = vmatpush3.bf16.msra.mxu1 %v3792_v57  ;;  %v1371_v44 = vrot.slane %v1369_v28, 1  ;;  %v439_v61 = vor.u32 %v437_v47, %v436_v50  ;;  %v4474_v24 = vld [vmem:[#allocation2 + $0x30] sm:$0xff]  ;;  %v3809_v50 = vld [vmem:[#allocation9 + $0x1a0] sm:$0xff]  }
  0xaf   : > { %2984 = vmatprep.subr.bf16.mxu1 %v4054_v0  ;;  %v351_v56 = vpack.c.bf16 %v342_v17, %v341_v14  ;;  %v447_v63 = vrot.slane %v445_v54, 7  ;;  %v558_v29 = vshll.u32 %v4474_v24, 16  ;;  %v562_v37 = vshrl.u32 %v4474_v24, 16 }
  0xb0   : > { %3191 = vmatpush3.bf16.msra.mxu0 %v3790_v7  ;;  %v4448_v57 = vsel %vm509_vm4, %v1367_v43, %v1371_v44  ;;  %v442_v5 = vsel %vm4354_vm3, %v439_v61, %v441_v51  ;;  %v463_v7 = vld [vmem:[#allocation2 + $0x48] sm:$0x1f] }
  0xb1   : > { %2949 = vmatmul.mubr.bf16.gmra.mrb[4].mxu1 %v1356_v3  ;;  %3192 = vmatprep.subr.bf16.mxu0 %v4054_v0  ;;  %v4442_v45 = vld [vmem:[#allocation2 + $0x28] sm:$0xff]  ;;  %v456_v2 = vshrl.u32 %v351_v56, 16  ;;  %v459_v3 = vshll.u32 %v351_v56, 16  ;;  %443 = vst [vmem:[#allocation2 + $0x38] sm:$0x1f] %v442_v5  ;;  %v450_v9 = vor.u32 %v448_v55, %v447_v63  ;;  %v560_v34 = vrot.slane %v558_v29, 1 }
  0xb2   : > { %2952 = vmatprep.mubr.msk.bf16.mxu1 %vm4056_vm0, %v4054_v0  ;;  %2985 = vmatpush3.bf16.msra.mxu1 %v3795_v12  ;;  %v1377_v53 = vshll.u32 %v4442_v45, 16  ;;  %v1375_v12 = vor.u32 %v1373_v60, %v1371_v44  ;;  %v1381_v28 = vshrl.u32 %v4442_v45, 16  ;;  %v1634_v44 = vrot.slane %v4420_v23, 1  ;;  %v3811_v56 = vld [vmem:[#allocation9 + $0x1a8] sm:$0xff]   ;;  %v3813_v63 = vld [vmem:[#allocation9 + $0x1b0] sm:$0xff]   ;;  %v3815_v5 = vld [vmem:[#allocation9 + $0x1b8] sm:$0xff]  }
  0xb3   : > { %3157 = vmatmul.mubr.bf16.gmra.mrb[4].mxu0 %v1364_v26  ;;  %2986 = vmatprep.subr.bf16.mxu1 %v4054_v0  ;;  %v458_v10 = vrot.slane %v456_v2, 7  ;;  %v453_v13 = vsel %vm4354_vm3, %v450_v9, %v452_v6  ;;  %v564_v14 = vor.u32 %v562_v37, %v560_v34  ;;  %v1636_v55 = vrot.slane %v4442_v45, 1  ;;  %v3808_v9 = vld [vmem:[#allocation9 + $0x80] sm:$0xff]  }
  0xb4   : > { %3193 = vmatpush3.bf16.msra.mxu0 %v3791_v30  ;;  %3160 = vmatprep.mubr.msk.bf16.mxu0 %vm4056_vm0, %v4054_v0  ;;  %v1379_v8 = vrot.slane %v1377_v53, 1  ;;  %454 = vst [vmem:[#allocation2 + $0x40] sm:$0x1f] %v453_v13  ;;  %v3810_v13 = vld [vmem:[#allocation9 + $0x88] sm:$0xff]   ;;  %v3817_v37 = vld [vmem:[#allocation9 + $0x1c0] sm:$0xff]  }
  0xb5   : > { %3194 = vmatprep.subr.bf16.mxu0 %v4054_v0  ;;  %v461_v15 = vor.u32 %v459_v3, %v458_v10 }
  0xb6   : > { %2987 = vmatpush3.bf16.msra.mxu1 %v3798_v35  ;;  %v4467_v19 = vsel %vm509_vm4, %v1375_v12, %v1379_v8  ;;  %v1383_v33 = vor.u32 %v1381_v28, %v1379_v8  ;;  %v4496_v35 = vrot.slane %v4396_v59, 1  ;;  %v4572_v12 = vld [vmem:[#allocation2] sm:$0xff] }
  0xb7   : > { %2988 = vmatprep.subr.bf16.mxu1 %v4054_v0  ;;  %v464_v18 = vsel %vm4354_vm3, %v461_v15, %v463_v7  ;;  %v3816_v28 = vld [vmem:[#allocation9 + $0xa0] sm:$0xff]  }
  0xb8   : > { %3195 = vmatpush3.bf16.msra.mxu0 %v3793_v42  ;;  %465 = vst [vmem:[#allocation2 + $0x48] sm:$0x1f] %v464_v18  ;;  %v4483_v27 = vld [vmem:[#allocation2 + $0x38] sm:$0xff]  ;;  %v4503_v40 = vsel %vm509_vm4, %v1383_v33, %v560_v34 }
  0xb9   : > { %2953 = vmatmul.mubr.bf16.gmra.mrb[8].mxu1 %v1364_v26  ;;  %3196 = vmatprep.subr.bf16.mxu0 %v4054_v0  ;;  %v4480_v26 = vrot.slane %v4387_v39, 1  ;;  %v566_v1 = vshll.u32 %v4483_v27, 16  ;;  %v570_v48 = vshrl.u32 %v4483_v27, 16  ;;  %v1640_v8 = vrot.slane %v4483_v27, 1  ;;  %v3812_v18 = vld [vmem:[#allocation9 + $0x90] sm:$0xff]  }
  0xba   : > { %2956 = vmatprep.mubr.msk.bf16.mxu1 %vm4056_vm0, %v4054_v0  ;;  %2989 = vmatpush3.bf16.msra.mxu1 %v3800_v49  ;;  %v4528_v49 = vsel %vm929_vm5, %v4496_v35, %v1634_v44  ;;  %v3820_v33 = vld [vmem:[#allocation9 + $0xb0] sm:$0xff]  }
  0xbb   : > { %3161 = vmatmul.mubr.bf16.gmra.mrb[8].mxu0 %v4448_v57  ;;  %2990 = vmatprep.subr.bf16.mxu1 %v4054_v0  ;;  %v1631_v30 = vsel %vm929_vm5, %v1629_v25, %v4480_v26  ;;  %v568_v38 = vrot.slane %v566_v1, 1  ;;  %v4508_v42 = vsel %vm929_vm5, %v4480_v26, %v4496_v35  ;;  %v4515_v43 = vld [vmem:[#allocation2 + $0x40] sm:$0xff] }
  0xbc   : > { %3197 = vmatpush3.bf16.msra.mxu0 %v3794_v58  ;;  %3164 = vmatprep.mubr.msk.bf16.mxu0 %vm4056_vm0, %v4054_v0  ;;  %v574_v17 = vshll.u32 %v4515_v43, 16  ;;  %v578_v60 = vshrl.u32 %v4515_v43, 16  ;;  %v1642_v15 = vrot.slane %v4515_v43, 1 }
  0xbd   : > { %3198 = vmatprep.subr.bf16.mxu0 %v4054_v0  ;;  %v4522_v47 = vsel %vm509_vm4, %v564_v14, %v568_v38  ;;  %v572_v51 = vor.u32 %v570_v48, %v568_v38  ;;  %v3819_v38 = vld [vmem:[#allocation9 + $0x1c8] sm:$0xff]   ;;  %v3825_v14 = vld [vmem:[#allocation9 + $0x1e0] sm:$0xff]  }
  0xbe   : > { %2991 = vmatpush3.bf16.msra.mxu1 %v3802_v62  ;;  %v576_v53 = vrot.slane %v574_v17, 1  ;;  %v4544_v62 = vsel %vm929_vm5, %v1634_v44, %v1636_v55  ;;  %v4587_v21 = vsel %vm929_vm5, %v1640_v8, %v1642_v15  ;;  %v3829_v44 = vld [vmem:[#allocation9 + $0x1f0] sm:$0xff]   ;;  %v901_v48 = vld [vmem:[#allocation2] sm:$0xfe] }
  0xbf   : > { %2992 = vmatprep.subr.bf16.mxu1 %v4054_v0  ;;  %v491_v54 = vld [vmem:[#allocation2 + $0x48] sm:$0x1]  ;;  %v930_v17 = vrot.slane %v901_v48, 1  ;;  %v3851_v48 = vld [vmem:[#allocation2 + $0x18] sm:$0xff] }
  0xc0   : > { %3199 = vmatpush3.bf16.msra.mxu0 %v3796_v4  ;;  %v4540_v58 = vsel %vm509_vm4, %v572_v51, %v576_v53  ;;  %v582_v61 = vshll.u32 %v491_v54, 16  ;;  %v4550_v2 = vor.u32 %v578_v60, %v576_v53  ;;  %v1638_v4 = vrot.slane %v4474_v24, 1  ;;  %v3824_v53 = vld [vmem:[#allocation9 + $0xc0] sm:$0xff]  }
  0xc1   : > { %2957 = vmatmul.mubr.bf16.gmra.mrb[12].mxu1 %v4448_v57  ;;  %3200 = vmatprep.subr.bf16.mxu0 %v4054_v0  ;;  %v3832_v60 = vld [vmem:[#allocation9 + $0xe0] sm:$0xff]  }
  0xc2   : > { %2960 = vmatprep.mubr.msk.bf16.mxu1 %vm4056_vm0, %v4054_v0  ;;  %2993 = vmatpush3.bf16.msra.mxu1 %v3804_v16  ;;  %v584_v3 = vrot.slane %v582_v61, 1  ;;  %v4560_v7 = vsel %vm929_vm5, %v1636_v55, %v1638_v4  ;;  %v4570_v10 = vsel %vm929_vm5, %v1638_v4, %v1640_v8  ;;  %v947_v16 = vrot.slane %v491_v54, 1  ;;  %v3826_v54 = vld [vmem:[#allocation9 + $0xc8] sm:$0xff]   ;;  %v3828_v55 = vld [vmem:[#allocation9 + $0xd0] sm:$0xff]  }
  0xc3   : > { %3165 = vmatmul.mubr.bf16.gmra.mrb[12].mxu0 %v4467_v19  ;;  %2994 = vmatprep.subr.bf16.mxu1 %v4054_v0  ;;  %v3834_v61 = vld [vmem:[#allocation9 + $0xe8] sm:$0xff]  }
  0xc4   : > { %3201 = vmatpush3.bf16.msra.mxu0 %v3797_v20  ;;  %3204 = vmatprep.mubr.msk.bf16.mxu0 %vm4056_vm0, %v4054_v0  ;;  %v585_v6 = vsel %vm509_vm4, %v4550_v2, %v584_v3  ;;  %v4583_v20 = vsel %vm929_vm5, %v1642_v15, %v947_v16  ;;  %v3836_v3 = vld [vmem:[#allocation9 + $0xf0] sm:$0xff]   ;;  %v3840_v16 = vld [vmem:[#allocation9 + $0x220] sm:$0xff]  }
  0xc5   : > { %3202 = vmatprep.subr.bf16.mxu0 %v4054_v0 }
  0xc6   : > { %2995 = vmatpush3.bf16.msra.mxu1 %v3806_v22  ;;  %v4590_v22 = vld [vmem:[#allocation2 + $0x48] sm:$0xff] }
  0xc7   : > { %3032 = vmatprep.subr.bf16.mxu1 %v4054_v0  ;;  %v4599_v25 = vrot.slane %v4590_v22, 1 }
  0xc8   : > { %3203 = vmatpush3.bf16.msra.mxu0 %v3799_v52  ;;  %v3814_v52 = vld [vmem:[#allocation9 + $0x98] sm:$0xff]  }
  0xc9   : > { %2961 = vmatmul.mubr.bf16.gmra.mrb[16].mxu1 %v4467_v19  ;;  %3240 = vmatprep.subr.bf16.mxu0 %v4054_v0  ;;  %v4604_v29 = vsel %vm929_vm5, %v1642_v15, %v4599_v25  ;;  %v3837_v15 = vld [vmem:[#allocation9 + $0x210] sm:$0xff]  }
  0xca   : > { %2964 = vmatprep.mubr.msk.bf16.mxu1 %vm4056_vm0, %v4054_v0 }
  0xcb   : > { %3205 = vmatmul.mubr.bf16.vlgmr.msra.gmra.mrb[0].mxu0 %v1631_v30  ;;  %v4607_v30 = vld [vmem:[#allocation2 + $0x50] sm:$0x1] }
  0xcc   : > { %3208 = vmatprep.mubr.msk.bf16.mxu0 %vm4056_vm0, %v4054_v0  ;;  %3241 = vmatpush3.bf16.msra.mxu0 %v3801_v31  ;;  %v3818_v31 = vld [vmem:[#allocation9 + $0xa8] sm:$0xff]   ;;  %v1646_v1 = vrot.slane %v4607_v30, 1 }
  0xcd   : > { %3242 = vmatprep.subr.bf16.mxu0 %v4054_v0 }
  0xce   : > { %v1647_v34 = vsel %vm929_vm5, %v4599_v25, %v1646_v1  ;;  %v3847_v1 = vld [vmem:[#allocation9 + $0x108] sm:$0xff]  }
  0xd0   : > { %3243 = vmatpush3.bf16.msra.mxu0 %v3803_v36  ;;  %v3822_v36 = vld [vmem:[#allocation9 + $0xb8] sm:$0xff]  }
  0xd1   : > { %2965 = vmatmul.mubr.bf16.gmra.mrb[20].mxu1 %v4503_v40  ;;  %3244 = vmatprep.subr.bf16.mxu0 %v4054_v0 }
  0xd2   : > { %2968 = vmatprep.mubr.msk.bf16.mxu1 %vm4056_vm0, %v4054_v0 }
  0xd3   : > { %3209 = vmatmul.mubr.bf16.gmra.mrb[4].mxu0 %v4508_v42 }
  0xd4   : > { %3212 = vmatprep.mubr.msk.bf16.mxu0 %vm4056_vm0, %v4054_v0  ;;  %3245 = vmatpush3.bf16.msra.mxu0 %v3805_v41  ;;  %v3821_v41 = vld [vmem:[#allocation9 + $0x1d0] sm:$0xff]  }
  0xd5   : > { %3246 = vmatprep.subr.bf16.mxu0 %v4054_v0 }
  0xd8   : > { %3247 = vmatpush3.bf16.msra.mxu0 %v3807_v46  ;;  %v3831_v46 = vld [vmem:[#allocation9 + $0x1f8] sm:$0xff]  }
  0xd9   : > { %2969 = vmatmul.mubr.bf16.gmra.mrb[24].mxu1 %v4522_v47  ;;  %3248 = vmatprep.subr.bf16.mxu0 %v4054_v0 }
  0xda   : > { %2972 = vmatprep.mubr.msk.bf16.mxu1 %vm4056_vm0, %v4054_v0 }
  0xdb   : > { %3213 = vmatmul.mubr.bf16.gmra.mrb[8].mxu0 %v4528_v49 }
  0xdc   : > { %3216 = vmatprep.mubr.msk.bf16.mxu0 %vm4056_vm0, %v4054_v0  ;;  %3249 = vmatpush3.bf16.msra.mxu0 %v3809_v50  ;;  %v931_v50 = vrot.slane %v4381_v32, 1 }
  0xdd   : > { %3250 = vmatprep.subr.bf16.mxu0 %v4054_v0 }
  0xde   : > { %v932_v51 = vsel %vm929_vm5, %v930_v17, %v931_v50  ;;  %v3852_v17 = vld [vmem:[#allocation9 + $0x120] sm:$0xff]  }
  0xe0   : > { %3251 = vmatpush3.bf16.msra.mxu0 %v3811_v56  ;;  %v3830_v56 = vld [vmem:[#allocation9 + $0xd8] sm:$0xff]  }
  0xe1   : > { %2973 = vmatmul.mubr.bf16.gmra.mrb[28].mxu1 %v4540_v58  ;;  %3252 = vmatprep.subr.bf16.mxu0 %v4054_v0 }
  0xe2   : > { %2976 = vmatprep.mubr.msk.bf16.mxu1 %vm4056_vm0, %v4054_v0 }
  0xe3   : > { %3217 = vmatmul.mubr.bf16.gmra.mrb[12].mxu0 %v4544_v62 }
  0xe4   : > { %3220 = vmatprep.mubr.msk.bf16.mxu0 %vm4056_vm0, %v4054_v0  ;;  %3253 = vmatpush3.bf16.msra.mxu0 %v3813_v63 }
  0xe5   : > { %3254 = vmatprep.subr.bf16.mxu0 %v4054_v0 }
  0xe8   : > { %3255 = vmatpush3.bf16.msra.mxu0 %v3815_v5  ;;  %v3838_v5 = vld [vmem:[#allocation9 + $0xf8] sm:$0xff]  }
  0xe9   : > { %2977 = vmatmul.mubr.bf16.gmra.mrb[32].mxu1 %v585_v6  ;;  %3292 = vmatprep.subr.bf16.mxu0 %v4054_v0 }
  0xea   : > { %2996 = vmatprep.mubr.msk.bf16.mxu1 %vm4056_vm0, %v4054_v0 }
  0xeb   : > { %3221 = vmatmul.mubr.bf16.gmra.mrb[16].mxu0 %v4560_v7 }
  0xec   : > { %3224 = vmatprep.mubr.msk.bf16.mxu0 %vm4056_vm0, %v4054_v0 }
  0xf1   : > { %2997 = vmatmul.mubr.bf16.vlgmr.msra.gmra.mrb[0].mxu1 %v4572_v12 }
  0xf2   : > { %3033 = vmatpush3.bf16.msra.mxu1 %v3808_v9  ;;  %3000 = vmatprep.mubr.msk.bf16.mxu1 %vm4056_vm0, %v4054_v0  ;;  %v3833_v9 = vld [vmem:[#allocation9 + $0x200] sm:$0xff]  }
  0xf3   : > { %3225 = vmatmul.mubr.bf16.gmra.mrb[20].mxu0 %v4570_v10  ;;  %3034 = vmatprep.subr.bf16.mxu1 %v4054_v0 }
  0xf4   : > { %3228 = vmatprep.mubr.msk.bf16.mxu0 %vm4056_vm0, %v4054_v0 }
  0xf6   : > { %3035 = vmatpush3.bf16.msra.mxu1 %v3810_v13  ;;  %v3835_v13 = vld [vmem:[#allocation9 + $0x208] sm:$0xff]  }
  0xf7   : > { %3036 = vmatprep.subr.bf16.mxu1 %v4054_v0 }
  0xf9   : > { %3001 = vmatmul.mubr.bf16.gmra.mrb[4].mxu1 %v4381_v32  ;;  %v934_v32 = vsel %vm929_vm5, %v931_v50, %v4480_v26  ;;  %v2017_v26 = vld [vmem:[#allocation2 + $0x10] sm:$0xff] }
  0xfa   : > { %3004 = vmatprep.mubr.msk.bf16.mxu1 %vm4056_vm0, %v4054_v0  ;;  %3037 = vmatpush3.bf16.msra.mxu1 %v3812_v18  ;;  %v2047_v63 = vshll.u32 %v2017_v26, 16  ;;  %v2045_v4 = vshrl.u32 %v2017_v26, 16  ;;  %v3842_v18 = vld [vmem:[#allocation9 + $0x230] sm:$0xff]  }
  0xfb   : > { %3229 = vmatmul.mubr.bf16.gmra.mrb[24].mxu0 %v4587_v21  ;;  %3038 = vmatprep.subr.bf16.mxu1 %v4054_v0 }
  0xfc   : > { %3232 = vmatprep.mubr.msk.bf16.mxu0 %vm4056_vm0, %v4054_v0 }
  0xfe   : > { %3039 = vmatpush3.bf16.msra.mxu1 %v3814_v52  ;;  %v2100_v52 = vshll.u32 %v4590_v22, 16 }
  0xff   : > { %3040 = vmatprep.subr.bf16.mxu1 %v4054_v0 }
 0x101   : > { %3005 = vmatmul.mubr.bf16.gmra.mrb[8].mxu1 %v4387_v39 }
 0x102   : > { %3008 = vmatprep.mubr.msk.bf16.mxu1 %vm4056_vm0, %v4054_v0  ;;  %3041 = vmatpush3.bf16.msra.mxu1 %v3816_v28  ;;  %v3845_v28 = vld [vmem:[#allocation2 + $0x8] sm:$0xff] }
 0x103   : > { %3233 = vmatmul.mubr.bf16.gmra.mrb[28].mxu0 %v4604_v29  ;;  %3042 = vmatprep.subr.bf16.mxu1 %v4054_v0 }
 0x104   : > { %3236 = vmatprep.mubr.msk.bf16.mxu0 %vm4056_vm0, %v4054_v0 }
 0x106   : > { %3043 = vmatpush3.bf16.msra.mxu1 %v3818_v31  ;;  %v3846_v31 = vld [vmem:[#allocation9 + $0x100] sm:$0xff]  }
 0x107   : > { %3044 = vmatprep.subr.bf16.mxu1 %v4054_v0 }
 0x109   : > { %3009 = vmatmul.mubr.bf16.gmra.mrb[12].mxu1 %v4396_v59 }
 0x10a   : > { %3012 = vmatprep.mubr.msk.bf16.mxu1 %vm4056_vm0, %v4054_v0  ;;  %3045 = vmatpush3.bf16.msra.mxu1 %v3820_v33 }
 0x10b   : > { %3237 = vmatmul.mubr.bf16.gmra.mrb[32].mxu0 %v1647_v34  ;;  %3046 = vmatprep.subr.bf16.mxu1 %v4054_v0  ;;  %v2104_v34 = vshrl.u32 %v4590_v22, 16 }
 0x10c   : > { %3256 = vmatprep.mubr.msk.bf16.mxu0 %vm4056_vm0, %v4054_v0 }
 0x10e   : > { %3047 = vmatpush3.bf16.msra.mxu1 %v3822_v36  ;;  %v2108_v36 = vshll.u32 %v4572_v12, 16 }
 0x10f   : > { %3084 = vmatprep.subr.bf16.mxu1 %v4054_v0 }
 0x111   : > { %3013 = vmatmul.mubr.bf16.gmra.mrb[16].mxu1 %v4420_v23 }
 0x112   : > { %3016 = vmatprep.mubr.msk.bf16.mxu1 %vm4056_vm0, %v4054_v0 }
 0x113   : > { %3257 = vmatmul.mubr.bf16.vlgmr.msra.gmra.mrb[0].mxu0 %v4387_v39  ;;  %v3823_v39 = vld [vmem:[#allocation9 + $0x1d8] sm:$0xff]  }
 0x114   : > { %3260 = vmatprep.mubr.msk.bf16.mxu0 %vm4056_vm0, %v4054_v0  ;;  %3293 = vmatpush3.bf16.msra.mxu0 %v3817_v37  ;;  %v3848_v37 = vld [vmem:[#allocation2 + $0x10] sm:$0xff] }
 0x115   : > { %3294 = vmatprep.subr.bf16.mxu0 %v4054_v0 }
 0x118   : > { %3295 = vmatpush3.bf16.msra.mxu0 %v3819_v38  ;;  %v3849_v38 = vld [vmem:[#allocation9 + $0x110] sm:$0xff]  }
 0x119   : > { %3017 = vmatmul.mubr.bf16.gmra.mrb[20].mxu1 %v4442_v45  ;;  %3296 = vmatprep.subr.bf16.mxu0 %v4054_v0 }
 0x11a   : > { %3020 = vmatprep.mubr.msk.bf16.mxu1 %vm4056_vm0, %v4054_v0 }
 0x11b   : > { %3261 = vmatmul.mubr.bf16.gmra.mrb[4].mxu0 %v4396_v59  ;;  %v3827_v59 = vld [vmem:[#allocation9 + $0x1e8] sm:$0xff]  }
 0x11c   : > { %3264 = vmatprep.mubr.msk.bf16.mxu0 %vm4056_vm0, %v4054_v0  ;;  %3297 = vmatpush3.bf16.msra.mxu0 %v3821_v41  ;;  %v2110_v41 = vrot.slane %v2108_v36, 1 }
 0x11d   : > { %3298 = vmatprep.subr.bf16.mxu0 %v4054_v0 }
 0x120   : > { %3299 = vmatpush3.bf16.msra.mxu0 %v3823_v39  ;;  %v4758_v39 = vld [vmem:[#allocation2 + $0x58] sm:$0x1] }
 0x121   : > { %3021 = vmatmul.mubr.bf16.gmra.mrb[24].mxu1 %v4474_v24  ;;  %3300 = vmatprep.subr.bf16.mxu0 %v4054_v0 }
 0x122   : > { %3024 = vmatprep.mubr.msk.bf16.mxu1 %vm4056_vm0, %v4054_v0 }
 0x123   : > { %3265 = vmatmul.mubr.bf16.gmra.mrb[8].mxu0 %v4420_v23 }
 0x124   : > { %3268 = vmatprep.mubr.msk.bf16.mxu0 %vm4056_vm0, %v4054_v0  ;;  %3301 = vmatpush3.bf16.msra.mxu0 %v3825_v14  ;;  %v3850_v14 = vld [vmem:[#allocation9 + $0x118] sm:$0xff]  }
 0x125   : > { %3302 = vmatprep.subr.bf16.mxu0 %v4054_v0 }
 0x128   : > { %3303 = vmatpush3.bf16.msra.mxu0 %v3827_v59 }
 0x129   : > { %3025 = vmatmul.mubr.bf16.gmra.mrb[28].mxu1 %v4483_v27  ;;  %3304 = vmatprep.subr.bf16.mxu0 %v4054_v0 }
 0x12a   : > { %3028 = vmatprep.mubr.msk.bf16.mxu1 %vm4056_vm0, %v4054_v0 }
 0x12b   : > { %3269 = vmatmul.mubr.bf16.gmra.mrb[12].mxu0 %v4442_v45 }
 0x12c   : > { %3272 = vmatprep.mubr.msk.bf16.mxu0 %vm4056_vm0, %v4054_v0  ;;  %3305 = vmatpush3.bf16.msra.mxu0 %v3829_v44  ;;  %v2112_v44 = vshrl.u32 %v4572_v12, 16 }
 0x12d   : > { %3306 = vmatprep.subr.bf16.mxu0 %v4054_v0 }
 0x12e   : > { %v2114_v50 = vor.u32 %v2112_v44, %v2110_v41 }
 0x130   : > { %3307 = vmatpush3.bf16.msra.mxu0 %v3831_v46  ;;  %v2116_v46 = vshll.u32 %v4758_v39, 16 }
 0x131   : > { %3029 = vmatmul.mubr.bf16.gmra.mrb[32].mxu1 %v4515_v43  ;;  %3344 = vmatprep.subr.bf16.mxu0 %v4054_v0 }
 0x132   : > { %3048 = vmatprep.mubr.msk.bf16.mxu1 %vm4056_vm0, %v4054_v0 }
 0x133   : > { %3273 = vmatmul.mubr.bf16.gmra.mrb[16].mxu0 %v4474_v24 }
 0x134   : > { %3276 = vmatprep.mubr.msk.bf16.mxu0 %vm4056_vm0, %v4054_v0 }
 0x139   : > { %3049 = vmatmul.mubr.bf16.vlgmr.msra.gmra.mrb[0].mxu1 %v932_v51  ;;  %v2118_v51 = vrot.slane %v2116_v46, 1 }
 0x13a   : > { %3085 = vmatpush3.bf16.msra.mxu1 %v3824_v53  ;;  %3052 = vmatprep.mubr.msk.bf16.mxu1 %vm4056_vm0, %v4054_v0  ;;  %v3853_v53 = vld [vmem:[#allocation9 + $0x128] sm:$0xff]  }
 0x13b   : > { %3277 = vmatmul.mubr.bf16.gmra.mrb[20].mxu0 %v4483_v27  ;;  %3086 = vmatprep.subr.bf16.mxu1 %v4054_v0 }
 0x13c   : > { %3280 = vmatprep.mubr.msk.bf16.mxu0 %vm4056_vm0, %v4054_v0 }
 0x13e   : > { %3087 = vmatpush3.bf16.msra.mxu1 %v3826_v54  ;;  %v2119_v54 = vsel %vm509_vm4, %v2114_v50, %v2118_v51 }
 0x13f   : > { %3088 = vmatprep.subr.bf16.mxu1 %v4054_v0 }
 0x141   : > { %3053 = vmatmul.mubr.bf16.gmra.mrb[4].mxu1 %v934_v32  ;;  %v2300_v32 = vld [vmem:[#allocation2 + $0x10] sm:$0xfe] }
 0x142   : > { %3056 = vmatprep.mubr.msk.bf16.mxu1 %vm4056_vm0, %v4054_v0  ;;  %3089 = vmatpush3.bf16.msra.mxu1 %v3828_v55  ;;  %v3854_v55 = vld [vmem:[#allocation9 + $0x130] sm:$0xff]  }
 0x143   : > { %3281 = vmatmul.mubr.bf16.gmra.mrb[24].mxu0 %v4515_v43  ;;  %3090 = vmatprep.subr.bf16.mxu1 %v4054_v0 }
 0x144   : > { %3284 = vmatprep.mubr.msk.bf16.mxu0 %vm4056_vm0, %v4054_v0 }
 0x146   : > { %3091 = vmatpush3.bf16.msra.mxu1 %v3830_v56  ;;  %v2328_v56 = vrot.slane %v2300_v32, 1 }
 0x147   : > { %3092 = vmatprep.subr.bf16.mxu1 %v4054_v0 }
 0x148   : > { %v2330_v26 = vsel %vm929_vm5, %v2328_v56, %v4496_v35 }
 0x149   : > { %3057 = vmatmul.mubr.bf16.gmra.mrb[8].mxu1 %v4508_v42  ;;  %v2049_v42 = vrot.slane %v2047_v63, 1 }
 0x14a   : > { %3060 = vmatprep.mubr.msk.bf16.mxu1 %vm4056_vm0, %v4054_v0  ;;  %3093 = vmatpush3.bf16.msra.mxu1 %v3832_v60  ;;  %v3855_v60 = vld [vmem:[#allocation9 + $0x138] sm:$0xff]  }
 0x14b   : > { %3285 = vmatmul.mubr.bf16.gmra.mrb[28].mxu0 %v4590_v22  ;;  %3094 = vmatprep.subr.bf16.mxu1 %v4054_v0  ;;  %v2050_v6 = vor.u32 %v2049_v42, %v2045_v4 }
 0x14c   : > { %3288 = vmatprep.mubr.msk.bf16.mxu0 %vm4056_vm0, %v4054_v0 }
 0x14d   : > { %v2055_v8 = vsel %vm509_vm4, %v2050_v6, %v4411_v11  ;;  %v3839_v11 = vld [vmem:[#allocation9 + $0x218] sm:$0xff]  }
 0x14e   : > { %3095 = vmatpush3.bf16.msra.mxu1 %v3834_v61 }
 0x14f   : > { %3096 = vmatprep.subr.bf16.mxu1 %v4054_v0 }
 0x151   : > { %3061 = vmatmul.mubr.bf16.gmra.mrb[12].mxu1 %v4528_v49 }
 0x152   : > { %3064 = vmatprep.mubr.msk.bf16.mxu1 %vm4056_vm0, %v4054_v0  ;;  %3097 = vmatpush3.bf16.msra.mxu1 %v3836_v3 }
 0x153   : > { %3289 = vmatmul.mubr.bf16.gmra.mrb[32].mxu0 %v4572_v12  ;;  %3098 = vmatprep.subr.bf16.mxu1 %v4054_v0 }
 0x154   : > { %3308 = vmatprep.mubr.msk.bf16.mxu0 %vm4056_vm0, %v4054_v0 }
 0x156   : > { %3099 = vmatpush3.bf16.msra.mxu1 %v3838_v5 }
 0x157   : > { %3396 = vmatprep.subr.bf16.mxu1 %v4054_v0 }
 0x159   : > { %3065 = vmatmul.mubr.bf16.gmra.mrb[16].mxu1 %v4544_v62 }
 0x15a   : > { %3068 = vmatprep.mubr.msk.bf16.mxu1 %vm4056_vm0, %v4054_v0 }
 0x15b   : > { %3309 = vmatmul.mubr.bf16.vlgmr.msra.gmra.mrb[0].mxu0 %v2055_v8 }
 0x15c   : > { %3312 = vmatprep.mubr.msk.bf16.mxu0 %vm4056_vm0, %v4054_v0  ;;  %3345 = vmatpush3.bf16.msra.mxu0 %v3833_v9 }
 0x15d   : > { %3346 = vmatprep.subr.bf16.mxu0 %v4054_v0 }
 0x160   : > { %3347 = vmatpush3.bf16.msra.mxu0 %v3835_v13 }
 0x161   : > { %3069 = vmatmul.mubr.bf16.gmra.mrb[20].mxu1 %v4560_v7  ;;  %3348 = vmatprep.subr.bf16.mxu0 %v4054_v0 }
 0x162   : > { %3072 = vmatprep.mubr.msk.bf16.mxu1 %vm4056_vm0, %v4054_v0 }
 0x163   : > { %3313 = vmatmul.mubr.bf16.gmra.mrb[4].mxu0 %v4448_v57  ;;  %v3841_v57 = vld [vmem:[#allocation9 + $0x228] sm:$0xff]  }
 0x164   : > { %3316 = vmatprep.mubr.msk.bf16.mxu0 %vm4056_vm0, %v4054_v0  ;;  %3349 = vmatpush3.bf16.msra.mxu0 %v3837_v15 }
 0x165   : > { %3350 = vmatprep.subr.bf16.mxu0 %v4054_v0 }
 0x168   : > { %3351 = vmatpush3.bf16.msra.mxu0 %v3839_v11 }
 0x169   : > { %3073 = vmatmul.mubr.bf16.gmra.mrb[24].mxu1 %v4570_v10  ;;  %3352 = vmatprep.subr.bf16.mxu0 %v4054_v0 }
 0x16a   : > { %3076 = vmatprep.mubr.msk.bf16.mxu1 %vm4056_vm0, %v4054_v0 }
 0x16b   : > { %3317 = vmatmul.mubr.bf16.gmra.mrb[8].mxu0 %v4467_v19  ;;  %v3843_v19 = vld [vmem:[#allocation9 + $0x238] sm:$0xff]  }
 0x16c   : > { %3320 = vmatprep.mubr.msk.bf16.mxu0 %vm4056_vm0, %v4054_v0  ;;  %3353 = vmatpush3.bf16.msra.mxu0 %v3840_v16 }
 0x16d   : > { %3354 = vmatprep.subr.bf16.mxu0 %v4054_v0 }
 0x170   : > { %3355 = vmatpush3.bf16.msra.mxu0 %v3841_v57 }
 0x171   : > { %3077 = vmatmul.mubr.bf16.gmra.mrb[28].mxu1 %v4587_v21  ;;  %3356 = vmatprep.subr.bf16.mxu0 %v4054_v0 }
 0x172   : > { %3080 = vmatprep.mubr.msk.bf16.mxu1 %vm4056_vm0, %v4054_v0 }
 0x173   : > { %3321 = vmatmul.mubr.bf16.gmra.mrb[12].mxu0 %v4503_v40 }
 0x174   : > { %3324 = vmatprep.mubr.msk.bf16.mxu0 %vm4056_vm0, %v4054_v0  ;;  %3357 = vmatpush3.bf16.msra.mxu0 %v3842_v18 }
 0x175   : > { %3358 = vmatprep.subr.bf16.mxu0 %v4054_v0 }
 0x178   : > { %3359 = vmatpush3.bf16.msra.mxu0 %v3843_v19 }
 0x179   : > { %3081 = vmatmul.mubr.bf16.gmra.mrb[32].mxu1 %v4583_v20  ;;  %v2102_v20 = vrot.slane %v2100_v52, 1 }
 0x17a   : > { %3100 = vmatprep.mubr.msk.bf16.mxu1 %vm4056_vm0, %v4054_v0 }
 0x17b   : > { %3325 = vmatmul.mubr.bf16.gmra.mrb[16].mxu0 %v4522_v47  ;;  %v4746_v33 = vsel %vm509_vm4, %v4550_v2, %v2102_v20  ;;  %v4756_v2 = vor.u32 %v2104_v34, %v2102_v20 }
 0x17c   : > { %3328 = vmatprep.mubr.msk.bf16.mxu0 %vm4056_vm0, %v4054_v0 }
 0x17d   : > { %v2111_v59 = vsel %vm509_vm4, %v4756_v2, %v2110_v41 }
 0x181   : > { %3101 = vmatmul.mubr.bf16.vlgmr.msra.gmra.mrb[0].mxu1 %v3845_v28 }
 0x182   : > { %3404 = vmatpush3.bf16.msra.mxu1 %v3846_v31  ;;  %3104 = vmatprep.mubr.msk.bf16.mxu1 %vm4056_vm0, %v4054_v0 }
 0x183   : > { %3329 = vmatmul.mubr.bf16.gmra.mrb[20].mxu0 %v4540_v58  ;;  %3397 = vmatprep.subr.bf16.mxu1 %v4054_v0 }
 0x184   : > { %3332 = vmatprep.mubr.msk.bf16.mxu0 %vm4056_vm0, %v4054_v0 }
 0x186   : > { %3405 = vmatpush3.bf16.msra.mxu1 %v3847_v1 }
 0x187   : > { %3398 = vmatprep.subr.bf16.mxu1 %v4054_v0 }
 0x189   : > { %3105 = vmatmul.mubr.bf16.gmra.mrb[4].mxu1 %v3848_v37 }
 0x18a   : > { %3108 = vmatprep.mubr.msk.bf16.mxu1 %vm4056_vm0, %v4054_v0  ;;  %3406 = vmatpush3.bf16.msra.mxu1 %v3849_v38 }
 0x18b   : > { %3333 = vmatmul.mubr.bf16.gmra.mrb[24].mxu0 %v4746_v33  ;;  %3399 = vmatprep.subr.bf16.mxu1 %v4054_v0 }
 0x18c   : > { %3336 = vmatprep.mubr.msk.bf16.mxu0 %vm4056_vm0, %v4054_v0 }
 0x18e   : > { %3407 = vmatpush3.bf16.msra.mxu1 %v3850_v14 }
 0x18f   : > { %3400 = vmatprep.subr.bf16.mxu1 %v4054_v0 }
 0x191   : > { %3109 = vmatmul.mubr.bf16.gmra.mrb[8].mxu1 %v3851_v48 }
 0x192   : > { %3112 = vmatprep.mubr.msk.bf16.mxu1 %vm4056_vm0, %v4054_v0  ;;  %3408 = vmatpush3.bf16.msra.mxu1 %v3852_v17 }
 0x193   : > { %3337 = vmatmul.mubr.bf16.gmra.mrb[28].mxu0 %v2111_v59  ;;  %3401 = vmatprep.subr.bf16.mxu1 %v4054_v0 }
 0x194   : > { %3340 = vmatprep.mubr.msk.bf16.mxu0 %vm4056_vm0, %v4054_v0 }
 0x196   : > { %3409 = vmatpush3.bf16.msra.mxu1 %v3853_v53 }
 0x197   : > { %3402 = vmatprep.subr.bf16.mxu1 %v4054_v0 }
 0x199   : > { %3113 = vmatmul.mubr.bf16.gmra.mrb[12].mxu1 %v4420_v23  ;;  %v2343_v23 = vrot.slane %v4572_v12, 1 }
 0x19a   : > { %3116 = vmatprep.mubr.msk.bf16.mxu1 %vm4056_vm0, %v4054_v0  ;;  %3410 = vmatpush3.bf16.msra.mxu1 %v3854_v55 }
 0x19b   : > { %3341 = vmatmul.mubr.bf16.gmra.mrb[32].mxu0 %v2119_v54  ;;  %3403 = vmatprep.subr.bf16.mxu1 %v4054_v0 }
 0x19c   : > { %3360 = vmatprep.mubr.msk.bf16.mxu0 %vm4056_vm0, %v4054_v0 }
 0x19e   : > { %3411 = vmatpush3.bf16.msra.mxu1 %v3855_v60 }
 0x1a1   : > { %3117 = vmatmul.mubr.bf16.gmra.mrb[16].mxu1 %v4442_v45  ;;  %v2344_v45 = vsel %vm929_vm5, %v4599_v25, %v2343_v23 }
 0x1a2   : > { %3120 = vmatprep.mubr.msk.bf16.mxu1 %vm4056_vm0, %v4054_v0 }
 0x1a3   : > { %3361 = vmatmul.mubr.bf16.vlgmr.msra.gmra.mrb[0].mxu0 %v2330_v26 }
 0x1a4   : > { %3364 = vmatprep.mubr.msk.bf16.mxu0 %vm4056_vm0, %v4054_v0 }
 0x1a9   : > { %3121 = vmatmul.mubr.bf16.gmra.mrb[20].mxu1 %v4474_v24  ;;  %v2345_v24 = vrot.slane %v4758_v39, 1 }
 0x1aa   : > { %3124 = vmatprep.mubr.msk.bf16.mxu1 %vm4056_vm0, %v4054_v0 }
 0x1ab   : > { %3365 = vmatmul.mubr.bf16.gmra.mrb[4].mxu0 %v4528_v49  ;;  %v2346_v35 = vsel %vm929_vm5, %v2343_v23, %v2345_v24 }
 0x1ac   : > { %3368 = vmatprep.mubr.msk.bf16.mxu0 %vm4056_vm0, %v4054_v0 }
 0x1b1   : > { %3125 = vmatmul.mubr.bf16.gmra.mrb[24].mxu1 %v4483_v27  ;;  %v1417_v27 = vshll.u32 %v4607_v30, 16 }
 0x1b2   : > { %3128 = vmatprep.mubr.msk.bf16.mxu1 %vm4056_vm0, %v4054_v0 }
 0x1b3   : > { %3369 = vmatmul.mubr.bf16.gmra.mrb[8].mxu0 %v4544_v62 }
 0x1b4   : > { %3372 = vmatprep.mubr.msk.bf16.mxu0 %vm4056_vm0, %v4054_v0 }
 0x1b9   : > { %3129 = vmatmul.mubr.bf16.gmra.mrb[28].mxu1 %v4515_v43 }
 0x1ba   : > { %3132 = vmatprep.mubr.msk.bf16.mxu1 %vm4056_vm0, %v4054_v0 }
 0x1bb   : > { %3373 = vmatmul.mubr.bf16.gmra.mrb[12].mxu0 %v4560_v7 }
 0x1bc   : > { %3376 = vmatprep.mubr.msk.bf16.mxu0 %vm4056_vm0, %v4054_v0 }
 0x1c1   : > { %3133 = vmatmul.mubr.bf16.gmra.mrb[32].mxu1 %v4590_v22 }
 0x1c2   : > { %3168 = vmatprep.mubr.msk.bf16.mxu1 %vm4056_vm0, %v4054_v0 }
 0x1c3   : > { %3377 = vmatmul.mubr.bf16.gmra.mrb[16].mxu0 %v4570_v10 }
 0x1c4   : > { %3380 = vmatprep.mubr.msk.bf16.mxu0 %vm4056_vm0, %v4054_v0 }
 0x1c9   : > { %3169 = vmatmul.mubr.bf16.vlgmr.msra.gmra.mrb[16].mxu1 %v4503_v40  ;;  %v1419_v40 = vrot.slane %v1417_v27, 1 }
 0x1ca   : > { %3172 = vmatprep.mubr.msk.bf16.mxu1 %vm4056_vm0, %v4054_v0 }
 0x1cb   : > { %3381 = vmatmul.mubr.bf16.gmra.mrb[20].mxu0 %v4587_v21  ;;  %v1420_v43 = vsel %vm509_vm4, %v4756_v2, %v1419_v40 }
 0x1cc   : > { %3384 = vmatprep.mubr.msk.bf16.mxu0 %vm4056_vm0, %v4054_v0 }
 0x1d1   : > { %3173 = vmatmul.mubr.bf16.gmra.mrb[20].mxu1 %v4522_v47 }
 0x1d2   : > { %3176 = vmatprep.mubr.msk.bf16.mxu1 %vm4056_vm0, %v4054_v0 }
 0x1d3   : > { %3385 = vmatmul.mubr.bf16.gmra.mrb[24].mxu0 %v4604_v29 }
 0x1d4   : > { %3388 = vmatprep.mubr.msk.bf16.mxu0 %vm4056_vm0, %v4054_v0 }
 0x1d9   : > { %3177 = vmatmul.mubr.bf16.gmra.mrb[24].mxu1 %v4540_v58 }
 0x1da   : > { %3180 = vmatprep.mubr.msk.bf16.mxu1 %vm4056_vm0, %v4054_v0 }
 0x1db   : > { %3389 = vmatmul.mubr.bf16.gmra.mrb[28].mxu0 %v2344_v45 }
 0x1dc   : > { %3392 = vmatprep.mubr.msk.bf16.mxu0 %vm4056_vm0, %v4054_v0 }
 0x1e1   : > { %3181 = vmatmul.mubr.bf16.gmra.mrb[28].mxu1 %v4746_v33 }
 0x1e2   : > { %3184 = vmatprep.mubr.msk.bf16.mxu1 %vm4056_vm0, %v4054_v0 }
 0x1e3   : > { %3393 = vmatmul.mubr.bf16.gmra.mrb[32].mxu0 %v2346_v35 }
 0x1e9   : > { %3185 = vmatmul.mubr.bf16.gmra.mrb[32].mxu1 %v1420_v43 }
 0x254   : > { %v1229_v47 = vpop.f32.mrb[0].mxu1 }
 0x255   : > { %v3102_v49 = vpop.f32.mrb[1].mxu1 }
 0x256   : > { %v1232_v58 = vpop.f32.mrb[2].mxu1 }
 0x257   : > { %v3103_v62 = vpop.f32.mrb[3].mxu1 }
 0x25c   : > { %v1237_v7 = vpop.f32.mrb[4].mxu1 }
 0x25d   : > { %v3106_v10 = vpop.f32.mrb[5].mxu1 }
 0x25e   : > { %v1240_v12 = vpop.f32.mrb[6].mxu1 }
 0x25f   : > { %v3107_v21 = vpop.f32.mrb[7].mxu1 }
 0x264   : > { %v1245_v22 = vpop.f32.mrb[8].mxu1 }
 0x265   : > { %v3110_v25 = vpop.f32.mrb[9].mxu1 }
 0x266   : > { %v1248_v29 = vpop.f32.mrb[10].mxu1 }
 0x267   : > { %v3111_v30 = vpop.f32.mrb[11].mxu1 }
 0x26c   : > { %v1253_v0 = vpop.f32.mrb[12].mxu1 }
 0x26d   : > { %v3114_v61 = vpop.f32.mrb[13].mxu1 }
 0x26e   : > { %v1256_v63 = vpop.f32.mrb[14].mxu1 }
 0x26f   : > { %v3115_v3 = vpop.f32.mrb[15].mxu1 }
 0x276   : > { %v2438_v4 = vpop.f32.mrb[0].mxu0 }
 0x277   : > { %v3412_v42 = vadd.f32 %v2438_v4, %v1229_v47  ;;  %v3362_v5 = vpop.f32.mrb[1].mxu0 }
 0x278   : > { %v2441_v6 = vpop.f32.mrb[2].mxu0 }
 0x279   : > { %2528 = vst.msk [vmem:[%s4839_s21] sm:$0xff] %vm2527_vm6, %v3412_v42  ;;  %v3413_v8 = vadd.f32 %v2441_v6, %v1232_v58  ;;  %v3363_v9 = vpop.f32.mrb[3].mxu0 }
 0x27b   : > { %2530 = vst.msk [vmem:[%s4839_s21 + $0x8] sm:$0x1] %vm2529_vm7, %v3413_v8 }
 0x27e   : > { %v2446_v13 = vpop.f32.mrb[4].mxu0 }
 0x27f   : > { %v3414_v15 = vadd.f32 %v2446_v13, %v1237_v7  ;;  %v3366_v11 = vpop.f32.mrb[5].mxu0 }
 0x280   : > { %v2449_v16 = vpop.f32.mrb[6].mxu0 }
 0x281   : > { %2756 = vst.msk [vmem:[%s4839_s21 + $0x10] sm:$0xff] %vm2527_vm6, %v3414_v15  ;;  %v3415_v57 = vadd.f32 %v2449_v16, %v1240_v12  ;;  %v3367_v18 = vpop.f32.mrb[7].mxu0 }
 0x283   : > { %2757 = vst.msk [vmem:[%s4839_s21 + $0x18] sm:$0x1] %vm2529_vm7, %v3415_v57 }
 0x286   : > { %v2454_v19 = vpop.f32.mrb[8].mxu0 }
 0x287   : > { %v3416_v52 = vadd.f32 %v2454_v19, %v1245_v22  ;;  %v3370_v28 = vpop.f32.mrb[9].mxu0 }
 0x288   : > { %v2457_v31 = vpop.f32.mrb[10].mxu0 }
 0x289   : > { %2758 = vst.msk [vmem:[%s4839_s21 + $0x20] sm:$0xff] %vm2527_vm6, %v3416_v52  ;;  %v3417_v20 = vadd.f32 %v2457_v31, %v1248_v29  ;;  %v3371_v1 = vpop.f32.mrb[11].mxu0 }
 0x28b   : > { %2759 = vst.msk [vmem:[%s4839_s21 + $0x28] sm:$0x1] %vm2529_vm7, %v3417_v20 }
 0x28e   : > { %v2462_v33 = vpop.f32.mrb[12].mxu0 }
 0x28f   : > { %v3418_v34 = vadd.f32 %v2462_v33, %v1253_v0  ;;  %v3374_v36 = vpop.f32.mrb[13].mxu0 }
 0x290   : > { %v2465_v37 = vpop.f32.mrb[14].mxu0 }
 0x291   : > { %2760 = vst.msk [vmem:[%s4839_s21 + $0x30] sm:$0xff] %vm2527_vm6, %v3418_v34  ;;  %v3419_v38 = vadd.f32 %v2465_v37, %v1256_v63  ;;  %v3375_v2 = vpop.f32.mrb[15].mxu0 }
 0x293   : > { %2761 = vst.msk [vmem:[%s4839_s21 + $0x38] sm:$0x1] %vm2529_vm7, %v3419_v38 }
 0x296   : > { %v2470_v41 = vpop.f32.mrb[16].mxu0 }
 0x297   : > { %v3378_v39 = vpop.f32.mrb[17].mxu0 }
 0x298   : > { %v2473_v14 = vpop.f32.mrb[18].mxu0 }
 0x299   : > { %v3379_v59 = vpop.f32.mrb[19].mxu0 }
 0x29c   : > { %v1544_v44 = vpop.f32.mrb[16].mxu1 }
 0x29d   : > { %v3420_v46 = vadd.f32 %v2470_v41, %v1544_v44  ;;  %v3170_v48 = vpop.f32.mrb[17].mxu1 }
 0x29e   : > { %v2478_v17 = vpop.f32.mrb[20].mxu0  ;;  %v1547_v50 = vpop.f32.mrb[18].mxu1 }
 0x29f   : > { %2762 = vst.msk [vmem:[%s4839_s21 + $0x40] sm:$0xff] %vm2527_vm6, %v3420_v46  ;;  %v3382_v51 = vpop.f32.mrb[21].mxu0  ;;  %v3421_v53 = vadd.f32 %v2473_v14, %v1547_v50  ;;  %v3171_v54 = vpop.f32.mrb[19].mxu1 }
 0x2a0   : > { %v2481_v32 = vpop.f32.mrb[22].mxu0 }
 0x2a1   : > { %2763 = vst.msk [vmem:[%s4839_s21 + $0x48] sm:$0x1] %vm2529_vm7, %v3421_v53  ;;  %v3383_v55 = vpop.f32.mrb[23].mxu0 }
 0x2a4   : > { %v1552_v56 = vpop.f32.mrb[20].mxu1 }
 0x2a5   : > { %v3422_v60 = vadd.f32 %v2478_v17, %v1552_v56  ;;  %v3174_v26 = vpop.f32.mrb[21].mxu1 }
 0x2a6   : > { %v2486_v23 = vpop.f32.mrb[24].mxu0  ;;  %v1555_v45 = vpop.f32.mrb[22].mxu1 }
 0x2a7   : > { %2764 = vst.msk [vmem:[%s4839_s21 + $0x50] sm:$0xff] %vm2527_vm6, %v3422_v60  ;;  %v3386_v24 = vpop.f32.mrb[25].mxu0  ;;  %v3423_v27 = vadd.f32 %v2481_v32, %v1555_v45  ;;  %v3175_v35 = vpop.f32.mrb[23].mxu1 }
 0x2a8   : > { %v2489_v40 = vpop.f32.mrb[26].mxu0 }
 0x2a9   : > { %2765 = vst.msk [vmem:[%s4839_s21 + $0x58] sm:$0x1] %vm2529_vm7, %v3423_v27  ;;  %v3387_v43 = vpop.f32.mrb[27].mxu0 }
 0x2ac   : > { %v1560_v47 = vpop.f32.mrb[24].mxu1 }
 0x2ad   : > { %v3424_v49 = vadd.f32 %v2486_v23, %v1560_v47  ;;  %v3178_v58 = vpop.f32.mrb[25].mxu1 }
 0x2ae   : > { %v2494_v62 = vpop.f32.mrb[28].mxu0  ;;  %v1563_v7 = vpop.f32.mrb[26].mxu1 }
 0x2af   : > { %2766 = vst.msk [vmem:[%s4839_s21 + $0x60] sm:$0xff] %vm2527_vm6, %v3424_v49  ;;  %v3390_v10 = vpop.f32.mrb[29].mxu0  ;;  %v3425_v12 = vadd.f32 %v2489_v40, %v1563_v7  ;;  %v3179_v21 = vpop.f32.mrb[27].mxu1 }
 0x2b0   : > { %v2497_v22 = vpop.f32.mrb[30].mxu0 }
 0x2b1   : > { %2767 = vst.msk [vmem:[%s4839_s21 + $0x68] sm:$0x1] %vm2529_vm7, %v3425_v12  ;;  %v3391_v25 = vpop.f32.mrb[31].mxu0 }
 0x2b4   : > { %v1568_v29 = vpop.f32.mrb[28].mxu1 }
 0x2b5   : > { %v3426_v30 = vadd.f32 %v2494_v62, %v1568_v29  ;;  %v3182_v0 = vpop.f32.mrb[29].mxu1 }
 0x2b6   : > { %v2502_v61 = vpop.f32.mrb[32].mxu0  ;;  %v1571_v63 = vpop.f32.mrb[30].mxu1 }
 0x2b7   : > { %2768 = vst.msk [vmem:[%s4839_s21 + $0x70] sm:$0xff] %vm2527_vm6, %v3426_v30  ;;  %v3394_v3 = vpop.f32.mrb[33].mxu0  ;;  %v3427_v4 = vadd.f32 %v2497_v22, %v1571_v63  ;;  %v3183_v42 = vpop.f32.mrb[31].mxu1 }
 0x2b8   : > { %v2505_v5 = vpop.f32.mrb[34].mxu0 }
 0x2b9   : > { %2769 = vst.msk [vmem:[%s4839_s21 + $0x78] sm:$0x1] %vm2529_vm7, %v3427_v4  ;;  %v3395_v6 = vpop.f32.mrb[35].mxu0 }
 0x2bc   : > { %v1576_v8 = vpop.f32.mrb[32].mxu1 }
 0x2bd   : > { %v3428_v9 = vadd.f32 %v2502_v61, %v1576_v8  ;;  %v3186_v13 = vpop.f32.mrb[33].mxu1 }
 0x2be   : > { %v1579_v15 = vpop.f32.mrb[34].mxu1 }
 0x2bf   : > { %2770 = vst.msk [vmem:[%s4839_s21 + $0x80] sm:$0xff] %vm2527_vm6, %v3428_v9  ;;  %v3429_v11 = vadd.f32 %v2505_v5, %v1579_v15  ;;  %v3187_v16 = vpop.f32.mrb[35].mxu1 }
 0x2c1   : > { %2771 = vst.msk [vmem:[%s4839_s21 + $0x88] sm:$0x1] %vm2529_vm7, %v3429_v11 }
 0x2c2   : > { %3983 = shalt.err (!%p3980_p13)
}
 0x2c3   : > { %s3984_s26 = scalar_lea.hbm %s4878_s7, 2304  ;;  %s3988_s9 = scalar_lea.hbm %s4932_s4, 4608 }
 0x2c4   : > { %p3985_p0 = scmp.ne.s32.totalorder %s4878_s7, %s3984_s26  ;;  %p3989_p9 = scmp.lt.u32.totalorder %s4878_s7, %s4932_s4 }
 0x2c5   : > { %p3990_p12 = scmp.lt.u32.totalorder %s3988_s9, %s3984_s26  ;;  %p3992_p1 = scmp.lt.u32.totalorder %s3984_s26, %s4878_s7 }
 0x2c6   : > { %p3986_p5 = pnand %p3985_p0, %p4228_p6 }
 0x2c7   : > { %p3991_p2 = por %p3990_p12, %p3989_p9 }
 0x2c8   : > { %p3987_p11 = pneg %p3986_p5 }
 0x2c9   : > { %p3993_p4 = por %p3992_p1, %p3991_p2 }
 0x2cb   : > { %p3994_p8 = pnand %p3993_p4, %p3987_p11 }
 0x2cd   : > { %3997 = shalt.err (!%p3994_p8)
}
 0x2ce   : > { %s4058_s21 = smov 128   ;;  %s4059_s23 = smov 8  }
 0x2cf   : > { %3700 = dma.vmem_to_hbm [thread:$0]  (%p4228_p6), %s4882_s29, 2304, %s4878_s7, %s2556_s19, %s4058_s21, %s4058_s21, %s4059_s23  }
 0x2d0 PF: > { %s2584_s5 = sand.u32 1, %s4032_s15   ;;  %p4952_p3 = scmp.ne.s32.totalorder %s4937_s22, 0 }
 0x2d1   : > { %p4953_p7 = scmp.ge.s32.totalorder %s4044_s18, 2  ;;  %s2585_s27 = scalar_lea.sflag [#allocation5], %s2584_s5 }
 0x2d3   : > { %p3717_p10 = pnand %p4953_p7, %p4952_p3 }
 0x2d5   : > { %4027 = dma.done.wait (!%p3717_p10), %s2585_s27, 2304  }
 0x2d6   : > { %4029 = vsyncadd (!%p3717_p10), %s2585_s27, 4294964992  ;;  %p19_p13 = scmp.ge.s32.totalorder %s4214_s25, 4   ;;  %s4954_s15 = smov %s4036_s16 }
 0x2d7   : > { %s4955_s16 = smov %s4040_s17  ;;  %s4956_s17 = smov %s4224_s13 }
 0x2d8   : > { %s4957_s18 = smov %s4214_s25  ;;  %21 = sbr.rel (!%p19_p13) target bundleno = 7 (0x7), region = 109 }
 0x2df   :  { %2590 = vsyncpa [#allocation4], 1 }
 0x2e0   :  { %2592 = vsyncpa [#allocation4 + $0x1], 1 }
 0x2e1   :  { %2593 = vsyncpa [#allocation7], 1 }
 0x2e2   :  { %2594 = vsyncpa [#allocation10], 1 }
 0x2e3   :  { %2595 = vsyncpa [#allocation5], 1 }
 0x2e4   :  { %2597 = vsyncpa [#allocation5 + $0x1], 1 }

</bundles_post_ra>
